<compile_context>
chip_gen: v7x
topology: tpu7x:2x2x1
jax: 0.10.0
libtpu: 0.0.40
codegen_flags: <defaults>
</compile_context>

<pallas_src>
import functools

import jax
import jax.numpy as jnp
import numpy as np
from jax.experimental import pallas as pl
from jax.experimental.pallas import tpu as pltpu


def _round_up(a: int, b: int) -> int:
    return ((a + b - 1) // b) * b


def make_siren_kernel(use_bf16: bool = False, small_k: int = 8):
    """Builds a fused SIREN forward kernel (any number of layers).

    Kernel refs: (x_ref, w0, b0, w1, b1, ..., wf, bf, out_ref) in the
    transposed "batch on lanes" layout. The last layer is a plain Linear
    (no sine), matching the PyTorch module.
    """

    def kernel(x_ref, *refs):
        out_ref = refs[-1]
        wb_refs = refs[:-1]
        num_layers = len(wb_refs) // 2

        h = x_ref[...].astype(jnp.float32)              # (n_in, tm)
        for li in range(num_layers):
            w = wb_refs[2 * li][...]                    # (out_f, in_f), omega pre-folded
            b = wb_refs[2 * li + 1][...]                # (out_f, 1)
            k_dim = w.shape[1]
            if k_dim <= small_k:
                # Tiny contraction: rank-1 VPU FMAs, skip the MXU entirely.
                z = b
                for k in range(k_dim):
                    z = z + w[:, k:k + 1] * h[k:k + 1, :]
            else:
                lhs, rhs = w, h
                if use_bf16:
                    # Optional v6e/v7x fast path; f32 accumulation kept.
                    lhs = lhs.astype(jnp.bfloat16)
                    rhs = rhs.astype(jnp.bfloat16)
                z = jnp.dot(lhs, rhs, preferred_element_type=jnp.float32) + b
            h = jnp.sin(z) if li < num_layers - 1 else z
        out_ref[...] = h.astype(out_ref.dtype)

    return kernel


def siren_forward(x, prepared_params, *, tm=2048, use_bf16=False):
    """SIREN forward pass. x: (N, n_in) float32.

    Returns (prediction (N, n_out), coordinates) like the PyTorch module.
    `prepared_params` must come from `prepare_siren_params` (omega folded,
    PyTorch (out_features, in_features) weight layout, (out_features, 1) bias).
    """
    N, n_in = x.shape
    n_out = prepared_params[-1][0].shape[0]

    # Tile choice: multiple of 128, large enough to amortize per-step grid
    # overhead, but keep >= 2 grid steps when possible (v7x has 2 TCs).
    tm = max(128, min(int(tm), _round_up(pl.cdiv(N, 2), 128)))
    n_pad = _round_up(N, tm)
    grid = (n_pad // tm,)

    xt = x.T                                            # (n_in, N): batch on lanes
    if n_pad != N:
        xt = jnp.pad(xt, ((0, 0), (0, n_pad - N)))      # zero-pad ragged batch

    flat_params = []
    in_specs = [pl.BlockSpec((n_in, tm), lambda i: (0, i))]
    for w, b in prepared_params:
        flat_params.extend((w, b))
        # Whole-array blocks: weights/biases stay resident in VMEM.
        in_specs.append(pl.BlockSpec(w.shape, lambda i: (0, 0)))
        in_specs.append(pl.BlockSpec(b.shape, lambda i: (0, 0)))

    out_t = pl.pallas_call(
        make_siren_kernel(use_bf16=use_bf16),
        out_shape=jax.ShapeDtypeStruct((n_out, n_pad), x.dtype),
        grid_spec=pltpu.PrefetchScalarGridSpec(
            num_scalar_prefetch=0,
            grid=grid,
            in_specs=in_specs,
            out_specs=pl.BlockSpec((n_out, tm), lambda i: (0, i)),
        ),
        compiler_params=pltpu.CompilerParams(
            dimension_semantics=("parallel",)),
    )(xt, *flat_params)

    pred = out_t[:, :N].T                               # back to (N, n_out)
    # TODO(synk): PyTorch's requires_grad_(True) on coordinates (autograd
    # bookkeeping) has no Pallas equivalent; coordinates are simply returned.
    return pred, x


def init_siren_params(key, n_in, n_hidden, n_out,
                      first_omega_0=30.0, hidden_omega_0=30.0):
    """Deterministic init mirroring the PyTorch module's scheme.

    Weights are in PyTorch nn.Linear layout: (out_features, in_features);
    biases are (out_features,). omega is NOT folded here.
    """
    params = []
    dims = [n_in] + list(n_hidden)
    keys = jax.random.split(key, 2 * (len(n_hidden) + 1))
    ki = 0
    # SineLayers
    for li, (fan_in, fan_out) in enumerate(zip(dims[:-1], dims[1:])):
        wb = 1.0 / fan_in if li == 0 else np.sqrt(6.0 / fan_in) / hidden_omega_0
        w = jax.random.uniform(keys[ki], (fan_out, fan_in), jnp.float32, -wb, wb)
        ki += 1
        bb = 1.0 / np.sqrt(fan_in)      # nn.Linear default bias init
        b = jax.random.uniform(keys[ki], (fan_out,), jnp.float32, -bb, bb)
        ki += 1
        params.append((w, b))
    # Final Linear
    fan_in = n_hidden[-1]
    wb = np.sqrt(6.0 / fan_in) / hidden_omega_0
    w = jax.random.uniform(keys[ki], (n_out, fan_in), jnp.float32, -wb, wb)
    ki += 1
    bb = 1.0 / np.sqrt(fan_in)
    b = jax.random.uniform(keys[ki], (n_out,), jnp.float32, -bb, bb)
    params.append((w, b))
    return params


def prepare_siren_params(params, first_omega_0=30.0, hidden_omega_0=30.0,
                         dtype=jnp.float32):
    """One-time prep: fold omega into sine-layer weights/biases and reshape
    biases to (out, 1) for the lane-major kernel layout. The PyTorch
    (out_features, in_features) weight layout is exactly what the transposed
    kernel (W @ x) wants, so weights are not transposed."""
    prepared = []
    n = len(params)
    for li, (w, b) in enumerate(params):
        if li < n - 1:
            omega = first_omega_0 if li == 0 else hidden_omega_0
            w = omega * w
            b = omega * b
        prepared.append((jnp.asarray(w, dtype),
                         jnp.asarray(b, dtype).reshape(-1, 1)))
    return prepared


def siren_reference(x, raw_params, first_omega_0=30.0, hidden_omega_0=30.0):
    """Pure-JAX reference matching the PyTorch module (no omega folding)."""
    h = x
    n = len(raw_params)
    for li, (w, b) in enumerate(raw_params):
        z = h @ w.T + b
        if li < n - 1:
            omega = first_omega_0 if li == 0 else hidden_omega_0
            z = jnp.sin(omega * z)
        h = z
    return h


if __name__ == "__main__":
    key = jax.random.PRNGKey(0)
    k_x1, k_x2, k_p = jax.random.split(key, 3)

    # Small Siren: n_in=2 ((x, t) coordinates), n_hidden=[32, 32, 32], n_out=1
    n_in, n_hidden, n_out = 2, [32, 32, 32], 1
    first_omega_0 = hidden_omega_0 = 30.0

    raw_params = init_siren_params(k_p, n_in, n_hidden, n_out,
                                   first_omega_0, hidden_omega_0)
    params = prepare_siren_params(raw_params, first_omega_0, hidden_omega_0)

    siren_fwd = jax.jit(siren_forward, static_argnames=("tm", "use_bf16"))

    # Test 1: small aligned batch.
    N1 = 256
    x1 = jax.random.uniform(k_x1, (N1, n_in), jnp.float32, -1.0, 1.0)
    pred1, coords1 = siren_fwd(x1, params)
    pred1 = jax.block_until_ready(pred1)
    ref1 = siren_reference(x1, raw_params, first_omega_0, hidden_omega_0)
    np.testing.assert_allclose(np.asarray(pred1), np.asarray(ref1),
                               rtol=2e-4, atol=2e-4)
    assert pred1.shape == (N1, n_out)
    assert coords1.shape == (N1, n_in)

    # Test 2: ragged batch (exercises zero-padding + multi-step grid).
    N2 = 333
    x2 = jax.random.uniform(k_x2, (N2, n_in), jnp.float32, -1.0, 1.0)
    pred2, _ = siren_fwd(x2, params)
    pred2 = jax.block_until_ready(pred2)
    ref2 = siren_reference(x2, raw_params, first_omega_0, hidden_omega_0)
    np.testing.assert_allclose(np.asarray(pred2), np.asarray(ref2),
                               rtol=2e-4, atol=2e-4)
    assert pred2.shape == (N2, n_out)

    print("KERNEL_OK")
</pallas_src>

<mosaic_0001>
module attributes {stable_mosaic.version = 11 : i64} {
  func.func @kernel(%arg0: i32, %arg1: memref<2x128xf32, #tpu.memory_space<vmem>>, %arg2: memref<32x2xf32, #tpu.memory_space<vmem>>, %arg3: memref<32x1xf32, #tpu.memory_space<vmem>>, %arg4: memref<32x32xf32, #tpu.memory_space<vmem>>, %arg5: memref<32x1xf32, #tpu.memory_space<vmem>>, %arg6: memref<32x32xf32, #tpu.memory_space<vmem>>, %arg7: memref<32x1xf32, #tpu.memory_space<vmem>>, %arg8: memref<1x32xf32, #tpu.memory_space<vmem>>, %arg9: memref<1x1xf32, #tpu.memory_space<vmem>>, %arg10: memref<1x128xf32, #tpu.memory_space<vmem>>) attributes {dimension_semantics = [#tpu.dimension_semantics<parallel>], iteration_bounds = array<i64: 2>, scalar_prefetch = 0 : i64, scratch_operands = 0 : i64, tpu.core_type = #tpu.core_type<tc>, window_params = [{transform_indices = @transform_0, window_bounds = array<i64: 2, 128>}, {pipeline_mode = #tpu.pipeline_mode<synchronous>, transform_indices = @transform_1, window_bounds = array<i64: 32, 2>}, {pipeline_mode = #tpu.pipeline_mode<synchronous>, transform_indices = @transform_2, window_bounds = array<i64: 32, 1>}, {pipeline_mode = #tpu.pipeline_mode<synchronous>, transform_indices = @transform_3, window_bounds = array<i64: 32, 32>}, {pipeline_mode = #tpu.pipeline_mode<synchronous>, transform_indices = @transform_4, window_bounds = array<i64: 32, 1>}, {pipeline_mode = #tpu.pipeline_mode<synchronous>, transform_indices = @transform_5, window_bounds = array<i64: 32, 32>}, {pipeline_mode = #tpu.pipeline_mode<synchronous>, transform_indices = @transform_6, window_bounds = array<i64: 32, 1>}, {pipeline_mode = #tpu.pipeline_mode<synchronous>, transform_indices = @transform_7, window_bounds = array<i64: 1, 32>}, {pipeline_mode = #tpu.pipeline_mode<synchronous>, transform_indices = @transform_8, window_bounds = array<i64: 1, 1>}, {transform_indices = @transform_9, window_bounds = array<i64: 1, 128>}]} {
    %c0 = arith.constant 0 : index
    %c0_0 = arith.constant 0 : index
    %0 = vector.load %arg1[%c0, %c0_0] : memref<2x128xf32, #tpu.memory_space<vmem>>, vector<2x128xf32>
    %c0_1 = arith.constant 0 : index
    %c0_2 = arith.constant 0 : index
    %1 = vector.load %arg2[%c0_1, %c0_2] : memref<32x2xf32, #tpu.memory_space<vmem>>, vector<32x2xf32>
    %c0_3 = arith.constant 0 : index
    %c0_4 = arith.constant 0 : index
    %2 = vector.load %arg3[%c0_3, %c0_4] : memref<32x1xf32, #tpu.memory_space<vmem>>, vector<32x1xf32>
    %3 = vector.extract_strided_slice %1 {offsets = [0, 0], sizes = [32, 1], strides = [1, 1]} : vector<32x2xf32> to vector<32x1xf32>
    %4 = vector.extract_strided_slice %0 {offsets = [0, 0], sizes = [1, 128], strides = [1, 1]} : vector<2x128xf32> to vector<1x128xf32>
    %5 = vector.broadcast %3 : vector<32x1xf32> to vector<32x128xf32>
    %6 = vector.broadcast %4 : vector<1x128xf32> to vector<32x128xf32>
    %7 = arith.mulf %5, %6 : vector<32x128xf32>
    %8 = vector.broadcast %2 : vector<32x1xf32> to vector<32x128xf32>
    %9 = arith.addf %8, %7 : vector<32x128xf32>
    %10 = vector.extract_strided_slice %1 {offsets = [0, 1], sizes = [32, 1], strides = [1, 1]} : vector<32x2xf32> to vector<32x1xf32>
    %11 = vector.extract_strided_slice %0 {offsets = [1, 0], sizes = [1, 128], strides = [1, 1]} : vector<2x128xf32> to vector<1x128xf32>
    %12 = vector.broadcast %10 : vector<32x1xf32> to vector<32x128xf32>
    %13 = vector.broadcast %11 : vector<1x128xf32> to vector<32x128xf32>
    %14 = arith.mulf %12, %13 : vector<32x128xf32>
    %15 = arith.addf %9, %14 : vector<32x128xf32>
    %16 = math.sin %15 : vector<32x128xf32>
    %c0_5 = arith.constant 0 : index
    %c0_6 = arith.constant 0 : index
    %17 = vector.load %arg4[%c0_5, %c0_6] : memref<32x32xf32, #tpu.memory_space<vmem>>, vector<32x32xf32>
    %c0_7 = arith.constant 0 : index
    %c0_8 = arith.constant 0 : index
    %18 = vector.load %arg5[%c0_7, %c0_8] : memref<32x1xf32, #tpu.memory_space<vmem>>, vector<32x1xf32>
    %cst = arith.constant dense<0.000000e+00> : vector<32x128xf32>
    %19 = tpu.matmul %17, %16, %cst {dimension_numbers = #tpu.dot_dimension_numbers<[1], [0], [0], [1], [0, 0, 1, 1], [], []>} : vector<32x32xf32>, vector<32x128xf32>, vector<32x128xf32> -> vector<32x128xf32>
    %20 = vector.broadcast %18 : vector<32x1xf32> to vector<32x128xf32>
    %21 = arith.addf %19, %20 : vector<32x128xf32>
    %22 = math.sin %21 : vector<32x128xf32>
    %c0_9 = arith.constant 0 : index
    %c0_10 = arith.constant 0 : index
    %23 = vector.load %arg6[%c0_9, %c0_10] : memref<32x32xf32, #tpu.memory_space<vmem>>, vector<32x32xf32>
    %c0_11 = arith.constant 0 : index
    %c0_12 = arith.constant 0 : index
    %24 = vector.load %arg7[%c0_11, %c0_12] : memref<32x1xf32, #tpu.memory_space<vmem>>, vector<32x1xf32>
    %cst_13 = arith.constant dense<0.000000e+00> : vector<32x128xf32>
    %25 = tpu.matmul %23, %22, %cst_13 {dimension_numbers = #tpu.dot_dimension_numbers<[1], [0], [0], [1], [0, 0, 1, 1], [], []>} : vector<32x32xf32>, vector<32x128xf32>, vector<32x128xf32> -> vector<32x128xf32>
    %26 = vector.broadcast %24 : vector<32x1xf32> to vector<32x128xf32>
    %27 = arith.addf %25, %26 : vector<32x128xf32>
    %28 = math.sin %27 : vector<32x128xf32>
    %c0_14 = arith.constant 0 : index
    %c0_15 = arith.constant 0 : index
    %29 = vector.load %arg8[%c0_14, %c0_15] : memref<1x32xf32, #tpu.memory_space<vmem>>, vector<1x32xf32>
    %c0_16 = arith.constant 0 : index
    %c0_17 = arith.constant 0 : index
    %30 = vector.load %arg9[%c0_16, %c0_17] : memref<1x1xf32, #tpu.memory_space<vmem>>, vector<1x1xf32>
    %cst_18 = arith.constant dense<0.000000e+00> : vector<1x128xf32>
    %31 = tpu.matmul %29, %28, %cst_18 {dimension_numbers = #tpu.dot_dimension_numbers<[1], [0], [0], [1], [0, 0, 1, 1], [], []>} : vector<1x32xf32>, vector<32x128xf32>, vector<1x128xf32> -> vector<1x128xf32>
    %32 = vector.broadcast %30 : vector<1x1xf32> to vector<1x128xf32>
    %33 = arith.addf %31, %32 : vector<1x128xf32>
    %c0_19 = arith.constant 0 : index
    %c0_20 = arith.constant 0 : index
    %34 = vector.load %arg10[%c0_19, %c0_20] : memref<1x128xf32, #tpu.memory_space<vmem>>, vector<1x128xf32>
    tpu.vector_store %arg10[%c0_19, %c0_20], %33 {strides = array<i32>} : memref<1x128xf32, #tpu.memory_space<vmem>>, vector<1x128xf32>,
    return
  }
  func.func @transform_0(%arg0: i32) -> (i32, i32) {
    %c0_i32 = arith.constant 0 : i32
    %c0_i32_0 = arith.constant 0 : i32
    return %c0_i32, %arg0 : i32, i32
  }
  func.func @transform_1(%arg0: i32) -> (i32, i32) {
    %c0_i32 = arith.constant 0 : i32
    %c0_i32_0 = arith.constant 0 : i32
    %c0_i32_1 = arith.constant 0 : i32
    return %c0_i32, %c0_i32_0 : i32, i32
  }
  func.func @transform_2(%arg0: i32) -> (i32, i32) {
    %c0_i32 = arith.constant 0 : i32
    %c0_i32_0 = arith.constant 0 : i32
    %c0_i32_1 = arith.constant 0 : i32
    return %c0_i32, %c0_i32_0 : i32, i32
  }
  func.func @transform_3(%arg0: i32) -> (i32, i32) {
    %c0_i32 = arith.constant 0 : i32
    %c0_i32_0 = arith.constant 0 : i32
    %c0_i32_1 = arith.constant 0 : i32
    return %c0_i32, %c0_i32_0 : i32, i32
  }
  func.func @transform_4(%arg0: i32) -> (i32, i32) {
    %c0_i32 = arith.constant 0 : i32
    %c0_i32_0 = arith.constant 0 : i32
    %c0_i32_1 = arith.constant 0 : i32
    return %c0_i32, %c0_i32_0 : i32, i32
  }
  func.func @transform_5(%arg0: i32) -> (i32, i32) {
    %c0_i32 = arith.constant 0 : i32
    %c0_i32_0 = arith.constant 0 : i32
    %c0_i32_1 = arith.constant 0 : i32
    return %c0_i32, %c0_i32_0 : i32, i32
  }
  func.func @transform_6(%arg0: i32) -> (i32, i32) {
    %c0_i32 = arith.constant 0 : i32
    %c0_i32_0 = arith.constant 0 : i32
    %c0_i32_1 = arith.constant 0 : i32
    return %c0_i32, %c0_i32_0 : i32, i32
  }
  func.func @transform_7(%arg0: i32) -> (i32, i32) {
    %c0_i32 = arith.constant 0 : i32
    %c0_i32_0 = arith.constant 0 : i32
    %c0_i32_1 = arith.constant 0 : i32
    return %c0_i32, %c0_i32_0 : i32, i32
  }
  func.func @transform_8(%arg0: i32) -> (i32, i32) {
    %c0_i32 = arith.constant 0 : i32
    %c0_i32_0 = arith.constant 0 : i32
    %c0_i32_1 = arith.constant 0 : i32
    return %c0_i32, %c0_i32_0 : i32, i32
  }
  func.func @transform_9(%arg0: i32) -> (i32, i32) {
    %c0_i32 = arith.constant 0 : i32
    %c0_i32_0 = arith.constant 0 : i32
    return %c0_i32, %arg0 : i32, i32
  }
}

</mosaic_0001>

<bundles_post_ra>
// kernel: siren_forward.1
= control target key start
LH: loop header
LB: loop body
LE: loop exit
PB: predicated region body
PF: predicated region fallthrough
CT: control target
= control target key end

     0   :  { %s3617_s0 = inlined_call_operand.vmem [shape: f32[2,256], index: 0, kind: input, shape index: {}]   ;;  %s3618_s1 = inlined_call_operand.vmem [shape: f32[32,2], index: 1, kind: input, shape index: {}]   ;;  %s3619_s2 = inlined_call_operand.vmem [shape: f32[32,1], index: 2, kind: input, shape index: {}]   ;;  %s3620_s3 = inlined_call_operand.vmem [shape: f32[32,32], index: 3, kind: input, shape index: {}]   ;;  %s3621_s4 = inlined_call_operand.vmem [shape: f32[32,1], index: 4, kind: input, shape index: {}]   ;;  %s3622_s5 = inlined_call_operand.vmem [shape: f32[32,32], index: 5, kind: input, shape index: {}]   ;;  %s3623_s6 = inlined_call_operand.vmem [shape: f32[32,1], index: 6, kind: input, shape index: {}]   ;;  %s3624_s7 = inlined_call_operand.vmem [shape: f32[1,32], index: 7, kind: input, shape index: {}]   ;;  %s3625_s8 = inlined_call_operand.<no memory space> [shape: f32[1,1], index: 8, kind: input, shape index: {}]   ;;  %s3626_s9 = inlined_call_operand.hbm [shape: f32[1,256], index: 9, kind: output, shape index: {}]  }
   0x1   :  { %v14_v0 = vstv %s3625_s8 }
   0x2   :  { %15 = vst [vmem:[#allocation2] sm:$0x1] %v14_v0 }
   0x3   :  { %16 = vsyncpa [#allocation4], 0 }
   0x4   :  { %18 = vsyncpa [#allocation4 + $0x1], 0  ;;  %s2500_s11 = smov 0   ;;  %s2502_s12 = smov 0  }
   0x5   :  { %s2504_s13 = smov 0   ;;  %s2506_s14 = smov 0  }
   0x6 LB: > { %s2521_s8 = sadd.s32 4294967295, %s2433_s14   ;;  %s2070_s15 = sadd.s32 4294967294, %s2433_s14   ;;  %s2433_s14 = sphi %s2506_s14, %s3650_s14   ;;  %s2429_s13 = sphi %s2504_s13, %s3649_s13   ;;  %s2425_s12 = sphi %s2502_s12, %s3648_s12   ;;  %s2421_s11 = sphi %s2500_s11, %s3647_s11  }
   0x7   : > { %s2525_s16 = sadd.s32 1, %s2433_s14   ;;  %s225_s17 = sadd.s32 1, %s2429_s13 }
   0x8   : > { %s222_s18 = ssub.s32 %s2433_s14, %s2525_s16  ;;  %p235_p0 = scmp.ne.s32.totalorder %s2429_s13, %s2425_s12 }
   0x9   : > { %p223_p1 = scmp.eq.s32.totalorder %s222_s18, 0  ;;  %p236_p2 = scmp.eq.s32.totalorder %s2521_s8, 1 }
   0xa   : > { %p241_p3 = scmp.ne.s32.totalorder %s2425_s12, %s2421_s11  ;;  %p242_p4 = scmp.eq.s32.totalorder %s2070_s15, 1 }
   0xb   : > { %s2536_s19 = scalar_select %p223_p1, %s2429_s13, %s225_s17  }
   0xc   : > { %p2538_p5 = por %p236_p2, %p235_p0  ;;  %p2542_p6 = por %p242_p4, %p241_p3 }
   0xd   : > { %p2073_p7 = scmp.ge.s32.totalorder %s2433_s14, 1  ;;  %p291_p8 = scmp.lt.s32.totalorder %s2433_s14, 3 }
   0xf   : > { %p292_p9 = pnand %p2073_p7, %p291_p8 }
  0x10   : > { %v334_v1 = vld [vmem:[%s3619_s2] sm:$0xff] (!%p292_p9)  ;;  %v2435_v3 = vmov (!%p292_p9), 0   ;;  %v335_v4 = vld [vmem:[%s3619_s2 + $0x8] sm:$0xff] (!%p292_p9)  ;;  %v333_v6 = vld [vmem:[%s3618_s1 + $0x18] sm:$0xff] (!%p292_p9)  ;;  %v2436_v7 = vmov (!%p292_p9), 1   ;;  %p325_p10 = scmp.lt.s32.totalorder (!%p292_p9), %s2521_s8, 1  ;;  %v358_v11 = vlaneseq (!%p292_p9) }
  0x11   : > { %295 = sbr.rel (%p292_p9) target bundleno = 1222 (0x4c6), region = 56  ;;  %v330_v2 = vld [vmem:[%s3618_s1] sm:$0xff] (!%p292_p9)  ;;  %2316 = vset.pattern.permute.xlu1 (!%p292_p9), %v2435_v3  ;;  %2315 = vset.pattern.permute.xlu0 (!%p292_p9), %v2435_v3  ;;  %v331_v5 = vld [vmem:[%s3618_s1 + $0x8] sm:$0xff] (!%p292_p9)  ;;  %v332_v8 = vld [vmem:[%s3618_s1 + $0x10] sm:$0xff] (!%p292_p9)  ;;  %vm862_vm1 = vcmask (!%p292_p9), 261120   ;;  %s2446_s17 = smov (!%p292_p9), [#allocation3]  }
  0x12   : > { %368 = vperm.xlu1 (!%p292_p9), %2316, %v334_v1   ;;  %340 = vperm.xlu0 (!%p292_p9), %2315, %v330_v2   ;;  %v336_v9 = vld [vmem:[%s3619_s2 + $0x10] sm:$0xff] (!%p292_p9)  ;;  %v337_v10 = vld [vmem:[%s3619_s2 + $0x18] sm:$0xff] (!%p292_p9)  ;;  %v2574_v12 = vshrl.u32 (!%p292_p9), %v358_v11, 7  ;;  %v834_v49 = vld [vmem:[%s3620_s3] sm:$0xff] (!%p292_p9)  ;;  %s2375_s18 = sshll.u32 (!%p292_p9), %s2446_s17, 4  ;;  %s2376_s18 = int_to_ptr.vmem [resolvable:$false] %s2375_s18 }
  0x13   : > { %2164 = vmatprep.mubr.msk.f32.mxu0 (!%p292_p9), %vm862_vm1, %v834_v49  ;;  %s2377_s22 = scalar_lea.vmem (!%p292_p9), %s2376_s18, 32 }
  0x14   : > { %v360_v14 = vsub.s32 (!%p292_p9), 0, %v2574_v12  ;;  %v408_v17 = vsub.s32 (!%p292_p9), 1, %v2574_v12 }
  0x16   : > { %373 = vperm.xlu1 (!%p292_p9), %2316, %v335_v4   ;;  %345 = vperm.xlu0 (!%p292_p9), %2315, %v331_v5  }
  0x18   : > { %s326_s25 = scalar_select %p325_p10, %s2521_s8, 1 }
  0x1a   : > { %2317 = vset.pattern.permute.xlu1 %v2436_v7  ;;  %355 = vperm.xlu0 %2315, %v333_v6   ;;  %s2074_s26 = sshll.u32 %s326_s25, 1  ;;  %s323_s25 = sand.u32 1, %s2425_s12  }
  0x1b   : > { %395 = vperm.xlu1 %2317, %v331_v5   ;;  %s328_s29 = scalar_lea.vmem %s3617_s0, %s2074_s26  ;;  %v838_v5 = vld [vmem:[%s3621_s4] sm:$0xff]  ;;  %s2132_s26 = sshll.u32 %s2521_s8, 4 }
  0x1c   : > { %v329_v16 = vld [vmem:[%s328_s29] sm:$0x3]  ;;  %s324_s27 = scalar_lea.vmem [#allocation3], %s323_s25  ;;  %s3575_s10 = scalar_lea.hbm %s3626_s9, %s2132_s26 }
  0x1d   : > { %v361_v18 = vrot.slane %v329_v16, %v360_v14  ;;  %v409_v22 = vrot.slane %v329_v16, %v408_v17  ;;  %v2437_v16 = vmov 2102212464   ;;  %s2015_s28 = sshll.u32 %s324_s27, 4  ;;  %s2003_s8 = scalar_lea.sflag [#allocation4], %s323_s25  ;;  %s3577_s28 = int_to_ptr.vmem [resolvable:$true] %s2015_s28 }
  0x1e   : > { %2319 = vset.pattern.permute.xlu0 %v2436_v7  ;;  %s2371_s15 = scalar_lea.vmem %s3577_s28, 16  ;;  %p2378_p0 = scmp.lt.s32.totalorder %s3577_s28, %s2376_s18 }
  0x1f   : > { %2318 = vset.pattern.permute.xlu1 %v2435_v3  ;;  %391 = vperm.xlu0 %2319, %v330_v2   ;;  %p2372_p11 = scmp.ne.s32.totalorder %s3577_s28, %s2371_s15  ;;  %p2379_p1 = scmp.lt.s32.totalorder %s2377_s22, %s2371_s15 }
  0x20   : > { %350 = vperm.xlu1 %2318, %v332_v8  }
  0x21   : > { %p2373_p12 = pnand %p2372_p11, %p2538_p5  ;;  %p2380_p2 = por %p2379_p1, %p2378_p0 }
  0x23   : > { %399 = vperm.xlu0 %2319, %v332_v8   ;;  %v839_v8 = vld [vmem:[%s3621_s4 + $0x8] sm:$0xff]  ;;  %p2374_p13 = pneg %p2373_p12 }
  0x24   : > { %378 = vperm.xlu1 %2318, %v336_v9  }
  0x25   : > { %p2381_p3 = pnand %p2380_p2, %p2374_p13 }
  0x27   : > { %2322 = vset.pattern.permute.xlu0 %v2435_v3 }
  0x28   : > { %383 = vperm.xlu1 %2318, %v337_v10   ;;  %849 = vperm.xlu0 %2322, %v839_v8  }
  0x2c   : > { %2320 = vset.pattern.permute.xlu1 %v2436_v7 }
  0x2d   : > { %403 = vperm.xlu1 %2320, %v333_v6  }
  0x31   : > { %2321 = vset.pattern.permute.xlu1 %v2435_v3 }
  0x32   : > { %844 = vperm.xlu1 %2321, %v838_v5  }
  0x91   : > { %v369_v13 = vpop.permute.xlu1 %368  ;;  %v341_v15 = vpop.permute.xlu0 %340 }
  0x92   : > { %v362_v25 = vmul.f32 %v361_v18, %v341_v15  ;;  %v840_v15 = vld [vmem:[%s3621_s4 + $0x10] sm:$0xff] }
  0x93   : > { %854 = vperm.xlu1 %2321, %v840_v15  }
  0x94   : > { %v386_v30 = vadd.f32 %v369_v13, %v362_v25 }
  0x95   : > { %v374_v19 = vpop.permute.xlu1 %373  ;;  %v346_v20 = vpop.permute.xlu0 %345 }
  0x96   : > { %v363_v21 = vmul.f32 %v361_v18, %v346_v20 }
  0x98   : > { %v387_v26 = vadd.f32 %v374_v19, %v363_v21  ;;  %v1380_v21 = vld [vmem:[%s3623_s6] sm:$0xff] }
  0x99   : > { %v356_v23 = vpop.permute.xlu0 %355  ;;  %1386 = vperm.xlu0 %2322, %v1380_v21  }
  0x9a   : > { %v396_v24 = vpop.permute.xlu1 %395  ;;  %v365_v57 = vmul.f32 %v361_v18, %v356_v23 }
  0x9b   : > { %v411_v27 = vmul.f32 %v409_v22, %v396_v24 }
  0x9d   : > { %v2583_v28 = vadd.f32 %v411_v27, %v387_v26 }
  0x9e   : > { %v392_v29 = vpop.permute.xlu0 %391 }
  0x9f   : > { %v525_v31 = vand.u32 2139095040, %v2583_v28  ;;  %v410_v32 = vmul.f32 %v409_v22, %v392_v29  ;;  %v351_v33 = vpop.permute.xlu1 %350  ;;  %v522_v62 = vand.u32 2147483647, %v2583_v28 }
  0xa0   : > { %v364_v36 = vmul.f32 %v361_v18, %v351_v33  ;;  %v2438_v18 = vmov 920167782  }
  0xa1   : > { %v526_v34 = vshrl.u32 %v525_v31, 23  ;;  %v2586_v35 = vadd.f32 %v410_v32, %v386_v30  ;;  %v2627_v13 = vand.u32 8388607, %v522_v62  ;;  %v2439_v31 = vmov 1326507024  }
  0xa2   : > { %v400_v37 = vpop.permute.xlu0 %399 }
  0xa3   : > { %v2079_v38 = vadd.s32 4294967169, %v526_v34  ;;  %v421_v39 = vand.u32 2139095040, %v2586_v35  ;;  %v379_v40 = vpop.permute.xlu1 %378  ;;  %v412_v41 = vmul.f32 %v409_v22, %v400_v37  ;;  %v418_v43 = vand.u32 2147483647, %v2586_v35 }
  0xa4   : > { %v388_v42 = vadd.f32 %v379_v40, %v364_v36  ;;  %v2440_v36 = vmov 683565275  }
  0xa5   : > { %v532_v44 = vadd.s32 1, %v2079_v38  ;;  %v422_v45 = vshrl.u32 %v421_v39, 23  ;;  %v425_v53 = vand.u32 8388607, %v418_v43  ;;  %v841_v38 = vld [vmem:[%s3621_s4 + $0x18] sm:$0xff] }
  0xa6   : > { %v2590_v46 = vadd.f32 %v412_v41, %v388_v42  ;;  %859 = vperm.xlu1 %2321, %v841_v38  }
  0xa7   : > { %vm533_vm0 = vcmp.gt.s32.totalorder %v532_v44, 0  ;;  %v2075_v47 = vadd.s32 4294967169, %v422_v45  ;;  %v384_v48 = vpop.permute.xlu1 %383  ;;  %v426_v61 = vor.u32 8388608, %v425_v53  ;;  %v2441_v45 = vmov 2475754826  }
  0xa8   : > { %v534_v50 = vsel %vm533_vm0, %v532_v44, 0  ;;  %v626_v51 = vand.u32 2147483647, %v2590_v46  ;;  %v629_v52 = vand.u32 2139095040, %v2590_v46  ;;  %v389_v1 = vadd.f32 %v384_v48, %v365_v57  ;;  %v1382_v44 = vld [vmem:[%s3623_s6 + $0x10] sm:$0xff] }
  0xa9   : > { %v2600_v54 = vand.u32 31, %v534_v50  ;;  %v428_v55 = vadd.s32 1, %v2075_v47  ;;  %v2618_v9 = vshrl.u32 %v534_v50, 5  ;;  %v2623_v11 = vshll.u32 %v426_v61, 8  ;;  %1396 = vperm.xlu0 %2322, %v1382_v44  }
  0xaa   : > { %v630_v56 = vshrl.u32 %v629_v52, 23  ;;  %v633_v58 = vand.u32 8388607, %v626_v51  ;;  %v2442_v48 = vmov 2131351028  }
  0xab   : > { %vm429_vm2 = vcmp.gt.s32.totalorder %v428_v55, 0  ;;  %v2606_v63 = vsub.s32 32, %v2600_v54  ;;  %v2634_v17 = vshll.u32 %v2437_v16, %v2600_v54  ;;  %v2642_v20 = vshll.u32 %v2438_v18, %v2600_v54 }
  0xac   : > { %v2083_v59 = vadd.s32 4294967169, %v630_v56  ;;  %v404_v60 = vpop.permute.xlu1 %403  ;;  %v430_v0 = vsel %vm429_vm2, %v428_v55, 0  ;;  %v634_v6 = vor.u32 8388608, %v633_v58 }
  0xad   : > { %v413_v2 = vmul.f32 %v409_v22, %v404_v60  ;;  %v2608_v3 = vand.u32 31, %v430_v0  ;;  %v2638_v19 = vshrl.u32 %v2438_v18, %v2606_v63  ;;  %v2647_v22 = vshrl.u32 %v430_v0, 5  ;;  %v1381_v60 = vld [vmem:[%s3623_s6 + $0x8] sm:$0xff] }
  0xae   : > { %v636_v4 = vadd.s32 1, %v2083_v59  ;;  %v2658_v30 = vshll.u32 %v634_v6, 8  ;;  %1391 = vperm.xlu1 %2321, %v1381_v60  }
  0xaf   : > { %v2613_v7 = vadd.f32 %v413_v2, %v389_v1  ;;  %v2621_v10 = vsub.s32 32, %v2608_v3  ;;  %v444_v26 = vshll.u32 %v2437_v16, %v2608_v3  ;;  %v2656_v27 = vshll.u32 %v2438_v18, %v2608_v3  ;;  %v1918_v2 = vld [vmem:[#allocation2] sm:$0x1] }
  0xb0   : > { %vm637_vm3 = vcmp.gt.s32.totalorder %v636_v4, 0  ;;  %vm453_vm4 = vcmp.lt.s32.totalorder %v2647_v22, 4  ;;  %1921 = vperm.xlu0 %2322, %v1918_v2   ;;  %v438_v2 = vshll.u32 %v2441_v45, %v2608_v3  ;;  %vm450_vm15 = vcmp.lt.s32.totalorder %v2647_v22, 1 }
  0xb1   : > { %v445_v23 = vshrl.u32 %v2438_v18, %v2621_v10  ;;  %v638_v24 = vsel %vm637_vm3, %v636_v4, 0  ;;  %v730_v25 = vand.u32 2147483647, %v2613_v7  ;;  %v2662_v32 = vshrl.u32 %v2439_v31, %v2621_v10 }
  0xb2   : > { %v640_v29 = vand.u32 31, %v638_v24  ;;  %v639_v33 = vshrl.u32 %v638_v24, 5  ;;  %v733_v34 = vand.u32 2139095040, %v2613_v7  ;;  %v2667_v37 = vshrl.u32 %v2440_v36, %v2621_v10 }
  0xb3   : > { %v2672_v39 = vor.u32 %v445_v23, %v444_v26  ;;  %v737_v42 = vand.u32 8388607, %v730_v25  ;;  %vm451_vm0 = vcmp.lt.s32.totalorder %v2647_v22, 2  ;;  %vm452_vm2 = vcmp.lt.s32.totalorder %v2647_v22, 3 }
  0xb4   : > { %v641_v40 = vsub.s32 32, %v640_v29  ;;  %v643_v41 = vshll.u32 %v2440_v36, %v640_v29  ;;  %v646_v47 = vshll.u32 %v2441_v45, %v640_v29  ;;  %v649_v49 = vshll.u32 %v2442_v48, %v640_v29 }
  0xb5   : > { %v652_v50 = vshll.u32 %v2437_v16, %v640_v29  ;;  %v655_v52 = vshll.u32 %v2438_v18, %v640_v29  ;;  %vm658_vm5 = vcmp.lt.s32.totalorder %v639_v33, 1  ;;  %vm659_vm6 = vcmp.lt.s32.totalorder %v639_v33, 2 }
  0xb6   : > { %v642_v53 = vshrl.u32 %v2440_v36, %v641_v40  ;;  %v644_v55 = vshrl.u32 %v2441_v45, %v641_v40  ;;  %v647_v56 = vshrl.u32 %v2442_v48, %v641_v40  ;;  %v650_v57 = vshrl.u32 %v2437_v16, %v641_v40 }
  0xb7   : > { %v653_v58 = vshrl.u32 %v2438_v18, %v641_v40  ;;  %v656_v59 = vshrl.u32 %v2439_v31, %v641_v40  ;;  %vm660_vm7 = vcmp.lt.s32.totalorder %v639_v33, 3  ;;  %vm661_vm8 = vcmp.lt.s32.totalorder %v639_v33, 4  ;;  %v1383_v40 = vld [vmem:[%s3623_s6 + $0x18] sm:$0xff] }
  0xb8   : > { %v645_v61 = vor.u32 %v644_v55, %v643_v41  ;;  %v648_v0 = vor.u32 %v647_v56, %v646_v47  ;;  %v651_v1 = vor.u32 %v650_v57, %v649_v49  ;;  %v734_v6 = vshrl.u32 %v733_v34, 23  ;;  %1401 = vperm.xlu1 %2321, %v1383_v40  }
  0xb9   : > { %v654_v4 = vor.u32 %v653_v58, %v652_v50  ;;  %v657_v5 = vor.u32 %v656_v59, %v655_v52  ;;  %v449_v34 = vor.u32 %v2662_v32, %v2656_v27  ;;  %v738_v52 = vor.u32 8388608, %v737_v42 }
  0xba   : > { %v662_v8 = vsel %vm658_vm5, %v642_v53, %v645_v61  ;;  %v663_v15 = vsel %vm661_vm8, %v651_v1, 2102212464  ;;  %v666_v21 = vsel %vm658_vm5, %v645_v61, %v648_v0  ;;  %v670_v23 = vsel %vm658_vm5, %v648_v0, %v651_v1 }
  0xbb   : > { %v664_v24 = vsel %vm660_vm7, %v648_v0, %v663_v15  ;;  %v667_v26 = vsel %vm661_vm8, %v654_v4, 920167782  ;;  %v671_v29 = vsel %vm661_vm8, %v657_v5, 1326507024  ;;  %v2087_v38 = vadd.s32 4294967169, %v734_v6 }
  0xbc   : > { %v665_v41 = vsel %vm659_vm6, %v662_v8, %v664_v24  ;;  %v668_v44 = vsel %vm660_vm7, %v651_v1, %v667_v26  ;;  %v672_v47 = vsel %vm660_vm7, %v654_v4, %v671_v29  ;;  %v2720_v27 = vsel %vm453_vm4, %v2672_v39, 920167782 }
  0xbd   : > { %v669_v49 = vsel %vm659_vm6, %v666_v21, %v668_v44  ;;  %v673_v50 = vsel %vm659_vm6, %v670_v23, %v672_v47  ;;  %v740_v53 = vadd.s32 1, %v2087_v38  ;;  %v435_v32 = vshll.u32 %v2440_v36, %v2608_v3 }
  0xbe   : > { %v2709_v55 = vmul.u32.u64.low %v2658_v30, %v673_v50  ;;  %v2710_v56 = vmul.u32.u64.high %v2658_v30, %v673_v50, %v2709_v55  ;;  %v2713_v57 = vmul.u32.u64.low %v2658_v30, %v669_v49  ;;  %v2714_v58 = vmul.u32.u64.high %v2658_v30, %v669_v49, %v2713_v57 }
  0xbf   : > { %vm741_vm9 = vcmp.gt.s32.totalorder %v740_v53, 0  ;;  %v436_v33 = vshrl.u32 %v2441_v45, %v2621_v10  ;;  %v2728_v42 = vsel %vm453_vm4, %v449_v34, 1326507024  ;;  %v681_v59 = vmul.u32 %v2658_v30, %v665_v41 }
  0xc0   : > { %v742_v60 = vsel %vm741_vm9, %v740_v53, 0  ;;  %v439_v61 = vshrl.u32 %v2442_v48, %v2621_v10  ;;  %v2733_v1 = vshll.u32 %v738_v52, 8  ;;  %v441_v4 = vshll.u32 %v2442_v48, %v2608_v3 }
  0xc1   : > { %v744_v0 = vand.u32 31, %v742_v60  ;;  %vm683_vm10 = vc.u32 %v2710_v56, %v2713_v57  ;;  %v684_v5 = vadd.s32 1, %v2714_v58  ;;  %v743_v6 = vshrl.u32 %v742_v60, 5 }
  0xc2   : > { %v442_v30 = vshrl.u32 %v2437_v16, %v2621_v10  ;;  %v437_v21 = vor.u32 %v436_v33, %v435_v32  ;;  %v440_v23 = vor.u32 %v439_v61, %v438_v2  ;;  %vm557_vm3 = vcmp.lt.s32.totalorder %v2618_v9, 4 }
  0xc3   : > { %v745_v8 = vsub.s32 32, %v744_v0  ;;  %v747_v15 = vshll.u32 %v2440_v36, %v744_v0  ;;  %v685_v24 = vsel %vm683_vm10, %v684_v5, %v2714_v58  ;;  %v750_v26 = vshll.u32 %v2441_v45, %v744_v0 }
  0xc4   : > { %v753_v3 = vshll.u32 %v2442_v48, %v744_v0  ;;  %v756_v29 = vshll.u32 %v2437_v16, %v744_v0  ;;  %v686_v38 = vadd.s32 %v685_v24, %v681_v59  ;;  %v759_v10 = vshll.u32 %v2438_v18, %v744_v0 }
  0xc5   : > { %v748_v40 = vshrl.u32 %v2441_v45, %v745_v8  ;;  %v751_v34 = vshrl.u32 %v2442_v48, %v745_v8  ;;  %v754_v41 = vshrl.u32 %v2437_v16, %v745_v8  ;;  %v757_v44 = vshrl.u32 %v2438_v18, %v745_v8 }
  0xc6   : > { %v760_v47 = vshrl.u32 %v2439_v31, %v745_v8  ;;  %vm762_vm11 = vcmp.lt.s32.totalorder %v743_v6, 1  ;;  %v687_v49 = vadd.s32 536870912, %v686_v38  ;;  %v746_v50 = vshrl.u32 %v2440_v36, %v745_v8 }
  0xc7   : > { %v749_v52 = vor.u32 %v748_v40, %v747_v15  ;;  %v752_v53 = vor.u32 %v751_v34, %v750_v26  ;;  %v755_v55 = vor.u32 %v754_v41, %v753_v3  ;;  %v758_v58 = vor.u32 %v757_v44, %v756_v29 }
  0xc8   : > { %v761_v32 = vor.u32 %v760_v47, %v759_v10  ;;  %vm763_vm12 = vcmp.lt.s32.totalorder %v743_v6, 2  ;;  %v2756_v33 = vshrl.u32 %v687_v49, 30  ;;  %vm764_vm13 = vcmp.lt.s32.totalorder %v743_v6, 3 }
  0xc9   : > { %vm765_vm14 = vcmp.lt.s32.totalorder %v743_v6, 4  ;;  %v770_v59 = vsel %vm762_vm11, %v749_v52, %v752_v53  ;;  %v774_v0 = vsel %vm762_vm11, %v752_v53, %v755_v55  ;;  %v443_v24 = vor.u32 %v442_v30, %v441_v4 }
  0xca   : > { %v767_v60 = vsel %vm765_vm14, %v755_v55, 2102212464  ;;  %v771_v61 = vsel %vm765_vm14, %v758_v58, 920167782  ;;  %v775_v2 = vsel %vm765_vm14, %v761_v32, 1326507024  ;;  %v766_v26 = vsel %vm762_vm11, %v746_v50, %v749_v52 }
  0xcb   : > { %v689_v5 = vshll.u32 %v2756_v33, 30  ;;  %v772_v8 = vsel %vm764_vm13, %v755_v55, %v771_v61  ;;  %v776_v15 = vsel %vm764_vm13, %v758_v58, %v775_v2  ;;  %v768_v34 = vsel %vm764_vm13, %v752_v53, %v767_v60 }
  0xcc   : > { %v773_v3 = vsel %vm763_vm12, %v770_v59, %v772_v8  ;;  %v777_v29 = vsel %vm763_vm12, %v774_v0, %v776_v15  ;;  %v455_v30 = vsel %vm453_vm4, %v443_v24, 2102212464  ;;  %v460_v49 = vsel %vm452_vm2, %v443_v24, %v2720_v27 }
  0xcd   : > { %v2767_v40 = vsub.s32 %v686_v38, %v689_v5  ;;  %v2771_v10 = vmul.u32.u64.low %v2733_v1, %v777_v29  ;;  %v2772_v41 = vmul.u32.u64.high %v2733_v1, %v777_v29, %v2771_v10  ;;  %v458_v38 = vsel %vm450_vm15, %v437_v21, %v440_v23 }
  0xce   : > { %v2775_v44 = vmul.u32.u64.low %v2733_v1, %v773_v3  ;;  %v2776_v47 = vmul.u32.u64.high %v2733_v1, %v773_v3, %v2775_v44  ;;  %v769_v50 = vsel %vm763_vm12, %v766_v26, %v768_v34  ;;  %v461_v52 = vsel %vm451_vm0, %v458_v38, %v460_v49 }
  0xcf   : > { %v692_v4 = vsub.s32 0, %v2767_v40  ;;  %v462_v53 = vsel %vm450_vm15, %v440_v23, %v443_v24  ;;  %v464_v55 = vsel %vm452_vm2, %v2672_v39, %v2728_v42  ;;  %v454_v27 = vsel %vm450_vm15, %v2667_v37, %v437_v21 }
  0xd0   : > { %vm787_vm4 = vc.u32 %v2772_v41, %v2775_v44  ;;  %v456_v6 = vsel %vm452_vm2, %v440_v23, %v455_v30  ;;  %v788_v32 = vadd.s32 1, %v2776_v47  ;;  %v465_v59 = vsel %vm451_vm0, %v462_v53, %v464_v55 }
  0xd1   : > { %v2084_v58 = vmin.u32 %v692_v4, %v2767_v40  ;;  %v2805_v60 = vmul.u32.u64.low %v2623_v11, %v461_v52  ;;  %v2806_v61 = vmul.u32.u64.high %v2623_v11, %v461_v52, %v2805_v60  ;;  %v552_v39 = vshrl.u32 %v2439_v31, %v2606_v63 }
  0xd2   : > { %v785_v42 = vmul.u32 %v2733_v1, %v769_v50  ;;  %v2813_v0 = vmul.u32.u64.low %v2623_v11, %v465_v59  ;;  %v2814_v2 = vmul.u32.u64.high %v2623_v11, %v465_v59, %v2813_v0  ;;  %v789_v37 = vsel %vm787_vm4, %v788_v32, %v2776_v47 }
  0xd3   : > { %v457_v21 = vsel %vm451_vm0, %v454_v27, %v456_v6  ;;  %v540_v23 = vshrl.u32 %v2441_v45, %v2606_v63  ;;  %v543_v5 = vshrl.u32 %v2442_v48, %v2606_v63  ;;  %v550_v8 = vor.u32 %v2638_v19, %v2634_v17 }
  0xd4   : > { %v694_v15 = vclz %v2084_v58  ;;  %v790_v1 = vadd.s32 %v789_v37, %v785_v42  ;;  %v546_v24 = vshrl.u32 %v2437_v16, %v2606_v63  ;;  %v476_v26 = vadd.s32 1, %v2806_v61 }
  0xd5   : > { %v539_v22 = vshll.u32 %v2440_v36, %v2600_v54  ;;  %v542_v3 = vshll.u32 %v2441_v45, %v2600_v54  ;;  %v545_v29 = vshll.u32 %v2442_v48, %v2600_v54  ;;  %v553_v34 = vor.u32 %v552_v39, %v2642_v20 }
  0xd6   : > { %v791_v10 = vadd.s32 536870912, %v790_v1  ;;  %v473_v17 = vmul.u32 %v2623_v11, %v457_v21  ;;  %vm475_vm5 = vc.u32 %v2814_v2, %v2805_v60  ;;  %v563_v38 = vsel %vm557_vm3, %v550_v8, 920167782 }
  0xd7   : > { %v477_v19 = vsel %vm475_vm5, %v476_v26, %v2806_v61  ;;  %v541_v47 = vor.u32 %v540_v23, %v539_v22  ;;  %v544_v4 = vor.u32 %v543_v5, %v542_v3  ;;  %v547_v30 = vor.u32 %v546_v24, %v545_v29 }
  0xd8   : > { %v2085_v49 = vadd.s32 4294967294, %v694_v15  ;;  %v2841_v50 = vshrl.u32 %v791_v10, 30  ;;  %v530_v54 = vor.u32 8388608, %v2627_v13  ;;  %v478_v20 = vadd.s32 %v477_v19, %v473_v17 }
  0xd9   : > { %v567_v11 = vsel %vm557_vm3, %v553_v34, 1326507024  ;;  %vm554_vm6 = vcmp.lt.s32.totalorder %v2618_v9, 1  ;;  %vm556_vm7 = vcmp.lt.s32.totalorder %v2618_v9, 3  ;;  %vm555_vm9 = vcmp.lt.s32.totalorder %v2618_v9, 2 }
  0xda   : > { %v793_v52 = vshll.u32 %v2841_v50, 30  ;;  %v479_v53 = vadd.s32 536870912, %v478_v20  ;;  %v562_v55 = vsel %vm554_vm6, %v541_v47, %v544_v4  ;;  %v564_v58 = vsel %vm556_vm7, %v547_v30, %v563_v38 }
  0xdb   : > { %vm2086_vm8 = vcmp.lt.s32.totalorder %v2085_v49, 0  ;;  %v570_v13 = vshll.u32 %v530_v54, 8  ;;  %v565_v32 = vsel %vm555_vm9, %v562_v55, %v564_v58  ;;  %v566_v59 = vsel %vm554_vm6, %v544_v4, %v547_v30 }
  0xdc   : > { %v794_v27 = vsub.s32 %v790_v1, %v793_v52  ;;  %v2854_v6 = vshrl.u32 %v479_v53, 30  ;;  %v568_v61 = vsel %vm556_vm7, %v550_v8, %v567_v11  ;;  %v538_v42 = vshrl.u32 %v2440_v36, %v2606_v63 }
  0xdd   : > { %v559_v0 = vsel %vm557_vm3, %v547_v30, 2102212464  ;;  %v569_v37 = vsel %vm555_vm9, %v566_v59, %v568_v61  ;;  %v697_v21 = vsel %vm2086_vm8, 0, %v2085_v49  ;;  %v786_v11 = vadd.s32 %v2775_v44, %v2772_v41 }
  0xde   : > { %v796_v39 = vsub.s32 0, %v794_v27  ;;  %v481_v23 = vshll.u32 %v2854_v6, 30  ;;  %v2869_v5 = vmul.u32.u64.low %v570_v13, %v569_v37  ;;  %v2870_v15 = vmul.u32.u64.high %v570_v13, %v569_v37, %v2869_v5 }
  0xdf   : > { %v2872_v24 = vmul.u32.u64.low %v570_v13, %v565_v32  ;;  %v2873_v26 = vmul.u32.u64.high %v570_v13, %v565_v32, %v2872_v24  ;;  %v558_v63 = vsel %vm554_vm6, %v538_v42, %v541_v47  ;;  %v560_v22 = vsel %vm556_vm7, %v544_v4, %v559_v0 }
  0xe0   : > { %v2088_v1 = vmin.u32 %v796_v39, %v794_v27  ;;  %v482_v8 = vsub.s32 %v478_v20, %v481_v23  ;;  %v702_v3 = vsub.s32 4294967266, %v697_v21  ;;  %v561_v17 = vsel %vm555_vm9, %v558_v63, %v560_v22 }
  0xe1   : > { %vm579_vm10 = vc.u32 %v2870_v15, %v2872_v24  ;;  %v580_v19 = vadd.s32 1, %v2873_v26  ;;  %v577_v4 = vmul.u32 %v570_v13, %v561_v17  ;;  %v698_v20 = vsub.s32 32, %v697_v21 }
  0xe2   : > { %v798_v29 = vclz %v2088_v1  ;;  %v484_v34 = vsub.s32 0, %v482_v8  ;;  %v703_v38 = vadd.s32 127, %v702_v3  ;;  %v682_v9 = vadd.s32 %v2713_v57, %v2710_v56 }
  0xe3   : > { %v581_v47 = vsel %vm579_vm10, %v580_v19, %v2873_v26  ;;  %v474_v13 = vadd.s32 %v2805_v60, %v2814_v2  ;;  %v699_v26 = vshll.u32 %v2767_v40, %v697_v21  ;;  %vm732_vm13 = vcmp.lt.s32.totalorder %v2613_v7, 0 }
  0xe4   : > { %v2089_v10 = vadd.s32 4294967294, %v798_v29  ;;  %v2076_v30 = vmin.u32 %v484_v34, %v482_v8  ;;  %v582_v58 = vadd.s32 %v581_v47, %v577_v4  ;;  %v704_v32 = vshll.u32 %v703_v38, 23 }
  0xe5   : > { %v700_v0 = vshrl.u32 %v682_v9, %v698_v20  ;;  %vm420_vm15 = vcmp.lt.s32.totalorder %v2586_v35, 0  ;;  %vm2902_vm0 = vcmp.le.f32.partialorder %v730_v25, 0.7853982  ;;  %vm628_vm2 = vcmp.lt.s32.totalorder %v2590_v46, 0 }
  0xe6   : > { %vm2090_vm11 = vcmp.lt.s32.totalorder %v2089_v10, 0  ;;  %v486_v54 = vclz %v2076_v30  ;;  %v583_v42 = vadd.s32 536870912, %v582_v58  ;;  %v705_v56 = vor.u32 4788187, %v704_v32 }
  0xe7   : > { %v801_v49 = vsel %vm2090_vm11, 0, %v2089_v10  ;;  %v701_v29 = vor.u32 %v700_v0, %v699_v26  ;;  %vm2913_vm3 = vcmp.le.f32.partialorder %v418_v43, 0.7853982  ;;  %vm2927_vm4 = vcmp.le.f32.partialorder %v626_v51, 0.7853982 }
  0xe8   : > { %v802_v52 = vsub.s32 32, %v801_v49  ;;  %v806_v53 = vsub.s32 4294967266, %v801_v49  ;;  %v2077_v55 = vadd.s32 4294967294, %v486_v54  ;;  %v803_v39 = vshll.u32 %v794_v27, %v801_v49 }
  0xe9   : > { %v2892_v1 = vshrl.u32 %v583_v42, 30  ;;  %v706_v19 = vand.u32 2147483647, %v705_v56  ;;  %v708_v49 = vcvt.s32.f32 %v701_v29  ;;  %v816_v56 = vsub.s32 4, %v2841_v50 }
  0xea   : > { %v804_v59 = vshrl.u32 %v786_v11, %v802_v52  ;;  %v807_v61 = vadd.s32 127, %v806_v53  ;;  %vm2078_vm12 = vcmp.lt.s32.totalorder %v2077_v55, 0  ;;  %v712_v51 = vsub.s32 4, %v2756_v33 }
  0xeb   : > { %v489_v23 = vsel %vm2078_vm12, 0, %v2077_v55  ;;  %v585_v3 = vshll.u32 %v2892_v1, 30  ;;  %v709_v4 = vmul.f32 %v708_v49, %v706_v19  ;;  %v817_v29 = vsel %vm732_vm13, %v816_v56, %v2841_v50 }
  0xec   : > { %v808_v37 = vshll.u32 %v807_v61, 23  ;;  %v805_v41 = vor.u32 %v804_v59, %v803_v39  ;;  %v490_v44 = vsub.s32 32, %v489_v23  ;;  %v494_v5 = vsub.s32 4294967266, %v489_v23 }
  0xed   : > { %v491_v63 = vshll.u32 %v482_v8, %v489_v23  ;;  %v586_v2 = vsub.s32 %v582_v58, %v585_v3  ;;  %v710_v55 = vxor.u32 2147483648, %v709_v4  ;;  %v578_v61 = vadd.s32 %v2872_v24, %v2870_v15 }
  0xee   : > { %v809_v57 = vor.u32 4788187, %v808_v37  ;;  %v492_v22 = vshrl.u32 %v474_v13, %v490_v44  ;;  %v495_v27 = vadd.s32 127, %v494_v5  ;;  %v812_v10 = vcvt.s32.f32 %v805_v41 }
  0xef   : > { %v588_v47 = vsub.s32 0, %v586_v2  ;;  %v711_v37 = vsel %vm628_vm2, %v710_v55, %v709_v4  ;;  %v504_v41 = vsub.s32 4, %v2854_v6  ;;  %v608_v3 = vsub.s32 4, %v2892_v1 }
  0xf0   : > { %v810_v34 = vand.u32 2147483647, %v809_v57  ;;  %v493_v17 = vor.u32 %v492_v22, %v491_v63  ;;  %v496_v60 = vshll.u32 %v495_v27, 23  ;;  %v714_v26 = vsel %vm2927_vm4, %v2590_v46, %v711_v37 }
  0xf1   : > { %v2080_v21 = vmin.u32 %v588_v47, %v586_v2  ;;  %v505_v63 = vsel %vm420_vm15, %v504_v41, %v2854_v6  ;;  %vm524_vm5 = vcmp.lt.s32.totalorder %v2583_v28, 0  ;;  %vm523_vm6 = vcmp.le.f32.partialorder %v522_v62, 0.7853982 }
  0xf2   : > { %v813_v30 = vmul.f32 %v812_v10, %v810_v34  ;;  %v497_v38 = vor.u32 4788187, %v496_v60  ;;  %v500_v40 = vcvt.s32.f32 %v493_v17  ;;  %v507_v10 = vsel %vm2913_vm3, 0, %v505_v63 }
  0xf3   : > { %v590_v11 = vclz %v2080_v21  ;;  %v713_v17 = vsel %vm628_vm2, %v712_v51, %v2756_v33  ;;  %v819_v60 = vsel %vm2902_vm0, 0, %v817_v29  ;;  %v836_v29 = vld [vmem:[%s3620_s3 + $0x10] sm:$0xff] }
  0xf4   : > { %v498_v54 = vand.u32 2147483647, %v497_v38  ;;  %v814_v8 = vxor.u32 2147483648, %v813_v30  ;;  %v715_v38 = vsel %vm2927_vm4, 0, %v713_v17  ;;  %v823_v49 = vadd.s32 3, %v819_v60 }
  0xf5   : > { %v2081_v53 = vadd.s32 4294967294, %v590_v11  ;;  %v719_v4 = vadd.s32 3, %v715_v38  ;;  %vm822_vm4 = vweird.f32 %v2613_v7 }
  0xf6   : > { %v501_v20 = vmul.f32 %v500_v40, %v498_v54  ;;  %v815_v58 = vsel %vm732_vm13, %v814_v8, %v813_v30  ;;  %v511_v30 = vadd.s32 3, %v507_v10  ;;  %v850_v10 = vpop.permute.xlu0 %849 }
  0xf7   : > { %vm2082_vm14 = vcmp.lt.s32.totalorder %v2081_v53, 0  ;;  %v818_v25 = vsel %vm2902_vm0, %v2613_v7, %v815_v58  ;;  %v835_v7 = vld [vmem:[%s3620_s3 + $0x8] sm:$0xff] }
  0xf8   : > { %v502_v52 = vxor.u32 2147483648, %v501_v20  ;;  %v593_v9 = vsel %vm2082_vm14, 0, %v2081_v53  ;;  %2323 = vcosq.f32 %v818_v25  ;;  %v512_v8 = vand.u32 3, %v511_v30 }
  0xf9   : > { %v594_v39 = vsub.s32 32, %v593_v9  ;;  %v598_v42 = vsub.s32 4294967266, %v593_v9  ;;  %v595_v13 = vshll.u32 %v586_v2, %v593_v9  ;;  %2325 = vsinq.f32 %v818_v25 }
  0xfa   : > { %v503_v59 = vsel %vm420_vm15, %v502_v52, %v501_v20  ;;  %v609_v2 = vsel %vm524_vm5, %v608_v3, %v2892_v1  ;;  %v824_v52 = vand.u32 3, %v823_v49  ;;  %v720_v9 = vand.u32 3, %v719_v4 }
  0xfb   : > { %v596_v23 = vshrl.u32 %v578_v61, %v594_v39  ;;  %v599_v15 = vadd.s32 127, %v598_v42  ;;  %v506_v24 = vsel %vm2913_vm3, %v2586_v35, %v503_v59  ;;  %v611_v40 = vsel %vm523_vm6, 0, %v609_v2 }
  0xfc   : > { %2327 = vcosq.f32 %v506_v24  ;;  %v615_v11 = vadd.s32 3, %v611_v40  ;;  %vm514_vm7 = vcmp.eq.s32.totalorder %v512_v8, 0  ;;  %vm517_vm8 = vcmp.eq.s32.totalorder %v512_v8, 2 }
  0xfd   : > { %v597_v44 = vor.u32 %v596_v23, %v595_v13  ;;  %v600_v5 = vshll.u32 %v599_v15, 23  ;;  %2329 = vsinq.f32 %v506_v24  ;;  %vm826_vm9 = vcmp.eq.s32.totalorder %v824_v52, 0 }
  0xfe   : > { %2331 = vcosq.f32 %v714_v26  ;;  %v616_v61 = vand.u32 3, %v615_v11  ;;  %vm829_vm10 = vcmp.eq.s32.totalorder %v824_v52, 2  ;;  %vm722_vm11 = vcmp.eq.s32.totalorder %v720_v9, 0 }
  0xff   : > { %v601_v57 = vor.u32 4788187, %v600_v5  ;;  %v604_v27 = vcvt.s32.f32 %v597_v44  ;;  %2333 = vsinq.f32 %v714_v26  ;;  %vm725_vm12 = vcmp.eq.s32.totalorder %v720_v9, 2 }
 0x100   : > { %vm513_vm13 = vcmp.lt.s32.totalorder %v512_v8, 2  ;;  %vm825_vm14 = vcmp.lt.s32.totalorder %v824_v52, 2  ;;  %vm510_vm15 = vweird.f32 %v2586_v35  ;;  %vm621_vm0 = vcmp.eq.s32.totalorder %v616_v61, 2 }
 0x101   : > { %v602_v22 = vand.u32 2147483647, %v601_v57  ;;  %vm721_vm2 = vcmp.lt.s32.totalorder %v720_v9, 2  ;;  %vm618_vm3 = vcmp.eq.s32.totalorder %v616_v61, 0 }
 0x102   : > { %v2324_v19 = vpop.eup %2323 }
 0x103   : > { %v605_v34 = vmul.f32 %v604_v27, %v602_v22  ;;  %v2326_v47 = vpop.eup %2325  ;;  %v830_v58 = vxor.u32 2147483648, %v2324_v19 }
 0x104   : > { %v827_v55 = vxor.u32 2147483648, %v2326_v47 }
 0x105   : > { %v606_v6 = vxor.u32 2147483648, %v605_v34  ;;  %v831_v25 = vsel %vm829_vm10, %v830_v58, %v2326_v47 }
 0x106   : > { %v2328_v54 = vpop.eup %2327  ;;  %v828_v0 = vsel %vm826_vm9, %v2324_v19, %v827_v55 }
 0x107   : > { %v607_v50 = vsel %vm524_vm5, %v606_v6, %v605_v34  ;;  %v2330_v21 = vpop.eup %2329  ;;  %v518_v53 = vxor.u32 2147483648, %v2328_v54  ;;  %v832_v41 = vsel %vm825_vm14, %v828_v0, %v831_v25  ;;  %vm617_vm5 = vcmp.lt.s32.totalorder %v616_v61, 2  ;;  %v1376_v61 = vld [vmem:[%s3622_s5] sm:$0xff] }
 0x108   : > { %v610_v33 = vsel %vm523_vm6, %v2583_v28, %v607_v50  ;;  %v2332_v1 = vpop.eup %2331  ;;  %v515_v62 = vxor.u32 2147483648, %v2330_v21  ;;  %v833_v51 = vsel %vm822_vm4, nan, %v832_v41  ;;  %vm614_vm6 = vweird.f32 %v2583_v28  ;;  %v837_v28 = vld [vmem:[%s3620_s3 + $0x18] sm:$0xff]  ;;  %2178 = vmatprep.mubr.msk.f32.mxu1 %vm862_vm1, %v1376_v61 }
 0x109   : > { %2335 = vcosq.f32 %v610_v33  ;;  %v2334_v20 = vpop.eup %2333  ;;  %v726_v59 = vxor.u32 2147483648, %v2332_v1  ;;  %v519_v42 = vsel %vm517_vm8, %v518_v53, %v2330_v21 }
 0x10a   : > { %2337 = vsinq.f32 %v610_v33  ;;  %v723_v32 = vxor.u32 2147483648, %v2334_v20  ;;  %v516_v39 = vsel %vm514_vm7, %v2328_v54, %v515_v62  ;;  %vm718_vm7 = vweird.f32 %v2590_v46  ;;  %v845_v46 = vpop.permute.xlu1 %844 }
 0x10b   : > { %v727_v23 = vsel %vm725_vm12, %v726_v59, %v2334_v20  ;;  %v520_v24 = vsel %vm513_vm13, %v516_v39, %v519_v42 }
 0x10c   : > { %v724_v13 = vsel %vm722_vm11, %v2332_v1, %v723_v32  ;;  %v521_v56 = vsel %vm510_vm15, nan, %v520_v24 }
 0x10d   : > { %v728_v26 = vsel %vm721_vm2, %v724_v13, %v727_v23 }
 0x10e   : > { %v729_v27 = vsel %vm718_vm7, nan, %v728_v26 }
 0x10f   : > { %v2199_v3 = vpack.c.bf16 %v833_v51, %v729_v27 }
 0x112   : > { %v855_v34 = vpop.permute.xlu1 %854 }
 0x113   : > { %v2336_v37 = vpop.eup %2335 }
 0x114   : > { %v2338_v15 = vpop.eup %2337  ;;  %v622_v43 = vxor.u32 2147483648, %v2336_v37 }
 0x115   : > { %v619_v44 = vxor.u32 2147483648, %v2338_v15 }
 0x116   : > { %v623_v5 = vsel %vm621_vm0, %v622_v43, %v2338_v15 }
 0x117   : > { %v620_v57 = vsel %vm618_vm3, %v2336_v37, %v619_v44 }
 0x118   : > { %v624_v63 = vsel %vm617_vm5, %v620_v57, %v623_v5 }
 0x119   : > { %v625_v22 = vsel %vm614_vm6, nan, %v624_v63 }
 0x11a   : > { %v2195_v35 = vpack.c.bf16 %v625_v22, %v521_v56 }
 0x11c   : > { %2196 = vmatprep.subr.bf16.mxu0 %v2195_v35 }
 0x11d   : > { %2198 = vmatpush3.bf16.msra.mxu0 %v2195_v35 }
 0x11e   : > { %2200 = vmatprep.subr.bf16.mxu0 %v2199_v3 }
 0x121   : > { %2202 = vmatpush3.bf16.msra.mxu0 %v2199_v3 }
 0x124   : > { %2165 = vmatmul.mubr.msk.f32.vlgmr.msra.gmra.mrb[0].mxu0 %vm862_vm1, %v835_v7 }
 0x125   : > { %2167 = vmatprep.mubr.msk.f32.mxu0 %vm862_vm1, %v836_v29  ;;  %v860_v50 = vpop.permute.xlu1 %859 }
 0x128   : > { %2168 = vmatmul.mubr.msk.f32.gmra.mrb[2].mxu0 %vm862_vm1, %v837_v28 }
 0x1f7   : > { %v2166_v17 = vpop.f32.mrb[0].mxu0 }
 0x1f8   : > { %v2974_v6 = vadd.f32 %v2166_v17, %v850_v10  ;;  %v941_v60 = vpop.f32.mrb[1].mxu0 }
 0x1f9   : > { %v2976_v2 = vadd.f32 %v941_v60, %v845_v46 }
 0x1fa   : > { %v1064_v19 = vand.u32 2147483647, %v2974_v6  ;;  %v1067_v30 = vand.u32 2139095040, %v2974_v6 }
 0x1fb   : > { %v960_v38 = vand.u32 2147483647, %v2976_v2  ;;  %v963_v47 = vand.u32 2139095040, %v2976_v2  ;;  %v2169_v33 = vpop.f32.mrb[2].mxu0 }
 0x1fc   : > { %v1068_v49 = vshrl.u32 %v1067_v30, 23  ;;  %v1071_v54 = vand.u32 8388607, %v1064_v19  ;;  %v2984_v40 = vadd.f32 %v2169_v33, %v860_v50  ;;  %v951_v21 = vpop.f32.mrb[3].mxu0 }
 0x1fd   : > { %v964_v4 = vshrl.u32 %v963_v47, 23  ;;  %v967_v1 = vand.u32 8388607, %v960_v38  ;;  %v2989_v11 = vadd.f32 %v951_v21, %v855_v34 }
 0x1fe   : > { %v2099_v8 = vadd.s32 4294967169, %v1068_v49  ;;  %v1272_v20 = vand.u32 2147483647, %v2984_v40  ;;  %v1072_v52 = vor.u32 8388608, %v1071_v54  ;;  %v1275_v53 = vand.u32 2139095040, %v2984_v40 }
 0x1ff   : > { %v2095_v62 = vadd.s32 4294967169, %v964_v4  ;;  %v968_v58 = vor.u32 8388608, %v967_v1  ;;  %v1168_v39 = vand.u32 2147483647, %v2989_v11  ;;  %v1171_v44 = vand.u32 2139095040, %v2989_v11 }
 0x200   : > { %v1074_v55 = vadd.s32 1, %v2099_v8  ;;  %v1276_v32 = vshrl.u32 %v1275_v53, 23  ;;  %v2994_v59 = vand.u32 8388607, %v1272_v20  ;;  %v3001_v0 = vshll.u32 %v1072_v52, 8 }
 0x201   : > { %v970_v9 = vadd.s32 1, %v2095_v62  ;;  %v3003_v15 = vshll.u32 %v968_v58, 8 }
 0x202   : > { %vm1075_vm8 = vcmp.gt.s32.totalorder %v1074_v55, 0  ;;  %v2107_v25 = vadd.s32 4294967169, %v1276_v32  ;;  %v1280_v41 = vor.u32 8388608, %v2994_v59 }
 0x203   : > { %v1076_v42 = vsel %vm1075_vm8, %v1074_v55, 0  ;;  %vm971_vm9 = vcmp.gt.s32.totalorder %v970_v9, 0 }
 0x204   : > { %v1077_v37 = vshrl.u32 %v1076_v42, 5  ;;  %v1078_v13 = vand.u32 31, %v1076_v42  ;;  %v972_v23 = vsel %vm971_vm9, %v970_v9, 0  ;;  %v3011_v57 = vadd.s32 1, %v2107_v25 }
 0x205   : > { %v3005_v24 = vshrl.u32 %v972_v23, 5  ;;  %v974_v43 = vand.u32 31, %v972_v23 }
 0x206   : > { %v1079_v5 = vsub.s32 32, %v1078_v13  ;;  %v1081_v26 = vshll.u32 %v2440_v36, %v1078_v13  ;;  %v1084_v56 = vshll.u32 %v2441_v45, %v1078_v13  ;;  %v1087_v51 = vshll.u32 %v2442_v48, %v1078_v13 }
 0x207   : > { %v1090_v63 = vshll.u32 %v2437_v16, %v1078_v13  ;;  %v1093_v22 = vshll.u32 %v2438_v18, %v1078_v13  ;;  %vm1096_vm10 = vcmp.lt.s32.totalorder %v1077_v37, 1  ;;  %vm1097_vm11 = vcmp.lt.s32.totalorder %v1077_v37, 2 }
 0x208   : > { %v1082_v27 = vshrl.u32 %v2441_v45, %v1079_v5  ;;  %v1085_v35 = vshrl.u32 %v2442_v48, %v1079_v5  ;;  %v1088_v3 = vshrl.u32 %v2437_v16, %v1079_v5  ;;  %v1080_v7 = vshrl.u32 %v2440_v36, %v1079_v5 }
 0x209   : > { %v1091_v29 = vshrl.u32 %v2438_v18, %v1079_v5  ;;  %v1094_v28 = vshrl.u32 %v2439_v31, %v1079_v5  ;;  %vm1098_vm12 = vcmp.lt.s32.totalorder %v1077_v37, 3  ;;  %v975_v17 = vsub.s32 32, %v974_v43 }
 0x20a   : > { %v1083_v46 = vor.u32 %v1082_v27, %v1081_v26  ;;  %v1086_v34 = vor.u32 %v1085_v35, %v1084_v56  ;;  %v1089_v10 = vor.u32 %v1088_v3, %v1087_v51  ;;  %vm1099_vm13 = vcmp.lt.s32.totalorder %v1077_v37, 4 }
 0x20b   : > { %v1092_v60 = vor.u32 %v1091_v29, %v1090_v63  ;;  %v1095_v30 = vor.u32 %v1094_v28, %v1093_v22  ;;  %v977_v50 = vshll.u32 %v2440_v36, %v974_v43  ;;  %v980_v8 = vshll.u32 %v2441_v45, %v974_v43 }
 0x20c   : > { %v1100_v47 = vsel %vm1096_vm10, %v1080_v7, %v1083_v46  ;;  %v1101_v33 = vsel %vm1099_vm13, %v1089_v10, 2102212464  ;;  %v1104_v49 = vsel %vm1096_vm10, %v1083_v46, %v1086_v34  ;;  %v1108_v54 = vsel %vm1096_vm10, %v1086_v34, %v1089_v10 }
 0x20d   : > { %v1102_v21 = vsel %vm1098_vm12, %v1086_v34, %v1101_v33  ;;  %v1105_v4 = vsel %vm1099_vm13, %v1092_v60, 920167782  ;;  %v1109_v1 = vsel %vm1099_vm13, %v1095_v30, 1326507024  ;;  %v976_v53 = vshrl.u32 %v2440_v36, %v975_v17 }
 0x20e   : > { %v1106_v52 = vsel %vm1098_vm12, %v1089_v10, %v1105_v4  ;;  %v1110_v62 = vsel %vm1098_vm12, %v1092_v60, %v1109_v1  ;;  %v978_v55 = vshrl.u32 %v2441_v45, %v975_v17  ;;  %v1103_v58 = vsel %vm1097_vm11, %v1100_v47, %v1102_v21 }
 0x20f   : > { %v1107_v9 = vsel %vm1097_vm11, %v1104_v49, %v1106_v52  ;;  %v1111_v32 = vsel %vm1097_vm11, %v1108_v54, %v1110_v62  ;;  %v981_v61 = vshrl.u32 %v2442_v48, %v975_v17  ;;  %v983_v56 = vshll.u32 %v2442_v48, %v974_v43 }
 0x210   : > { %v3037_v42 = vmul.u32.u64.low %v3001_v0, %v1111_v32  ;;  %v3038_v25 = vmul.u32.u64.high %v3001_v0, %v1111_v32, %v3037_v42  ;;  %v3041_v13 = vmul.u32.u64.low %v3001_v0, %v1107_v9  ;;  %v3042_v23 = vmul.u32.u64.high %v3001_v0, %v1107_v9, %v3041_v13 }
 0x211   : > { %v979_v5 = vor.u32 %v978_v55, %v977_v50  ;;  %v982_v26 = vor.u32 %v981_v61, %v980_v8  ;;  %v984_v51 = vshrl.u32 %v2437_v16, %v975_v17  ;;  %v1119_v37 = vmul.u32 %v3001_v0, %v1103_v58 }
 0x212   : > { %v986_v63 = vshll.u32 %v2437_v16, %v974_v43  ;;  %v987_v22 = vshrl.u32 %v2438_v18, %v975_v17  ;;  %v990_v27 = vshrl.u32 %v2439_v31, %v975_v17  ;;  %v989_v3 = vshll.u32 %v2438_v18, %v974_v43 }
 0x213   : > { %v985_v35 = vor.u32 %v984_v51, %v983_v56  ;;  %vm992_vm14 = vcmp.lt.s32.totalorder %v3005_v24, 1  ;;  %vm993_vm15 = vcmp.lt.s32.totalorder %v3005_v24, 2  ;;  %vm1121_vm0 = vc.u32 %v3038_v25, %v3041_v13 }
 0x214   : > { %v1122_v7 = vadd.s32 1, %v3042_v23  ;;  %v988_v29 = vor.u32 %v987_v22, %v986_v63  ;;  %vm994_vm2 = vcmp.lt.s32.totalorder %v3005_v24, 3  ;;  %v991_v0 = vor.u32 %v990_v27, %v989_v3 }
 0x215   : > { %vm995_vm3 = vcmp.lt.s32.totalorder %v3005_v24, 4  ;;  %v996_v28 = vsel %vm992_vm14, %v976_v53, %v979_v5  ;;  %v1000_v46 = vsel %vm992_vm14, %v979_v5, %v982_v26  ;;  %v1004_v17 = vsel %vm992_vm14, %v982_v26, %v985_v35 }
 0x216   : > { %v1123_v34 = vsel %vm1121_vm0, %v1122_v7, %v3042_v23  ;;  %v997_v43 = vsel %vm995_vm3, %v985_v35, 2102212464  ;;  %v1001_v10 = vsel %vm995_vm3, %v988_v29, 920167782  ;;  %v1005_v47 = vsel %vm995_vm3, %v991_v0, 1326507024 }
 0x217   : > { %v1124_v60 = vadd.s32 %v1123_v34, %v1119_v37  ;;  %v998_v30 = vsel %vm994_vm2, %v982_v26, %v997_v43  ;;  %v1002_v50 = vsel %vm994_vm2, %v985_v35, %v1001_v10  ;;  %v1006_v54 = vsel %vm994_vm2, %v988_v29, %v1005_v47 }
 0x218   : > { %v999_v33 = vsel %vm993_vm15, %v996_v28, %v998_v30  ;;  %v1003_v49 = vsel %vm993_vm15, %v1000_v46, %v1002_v50  ;;  %vm1283_vm4 = vcmp.gt.s32.totalorder %v3011_v57, 0  ;;  %v1007_v4 = vsel %vm993_vm15, %v1004_v17, %v1006_v54 }
 0x219   : > { %v1125_v21 = vadd.s32 536870912, %v1124_v60  ;;  %v3068_v1 = vmul.u32.u64.low %v3003_v15, %v1003_v49  ;;  %v3069_v8 = vmul.u32.u64.high %v3003_v15, %v1003_v49, %v3068_v1  ;;  %v1284_v53 = vsel %vm1283_vm4, %v3011_v57, 0 }
 0x21a   : > { %v3073_v52 = vmul.u32.u64.low %v3003_v15, %v1007_v4  ;;  %v3074_v62 = vmul.u32.u64.high %v3003_v15, %v1007_v4, %v3073_v52  ;;  %v1172_v55 = vshrl.u32 %v1171_v44, 23  ;;  %v1286_v9 = vand.u32 31, %v1284_v53 }
 0x21b   : > { %v3079_v58 = vshrl.u32 %v1125_v21, 30  ;;  %v1015_v24 = vmul.u32 %v3003_v15, %v999_v33  ;;  %v3084_v32 = vshll.u32 %v1280_v41, 8  ;;  %v3088_v61 = vand.u32 8388607, %v1168_v39 }
 0x21c   : > { %v1018_v57 = vadd.s32 1, %v3069_v8  ;;  %v1285_v23 = vshrl.u32 %v1284_v53, 5  ;;  %v1287_v5 = vsub.s32 32, %v1286_v9  ;;  %vm1017_vm5 = vc.u32 %v3074_v62, %v3068_v1 }
 0x21d   : > { %v1127_v42 = vshll.u32 %v3079_v58, 30  ;;  %v1289_v44 = vshll.u32 %v2440_v36, %v1286_v9  ;;  %v1292_v15 = vshll.u32 %v2441_v45, %v1286_v9  ;;  %v2103_v59 = vadd.s32 4294967169, %v1172_v55 }
 0x21e   : > { %v1019_v26 = vsel %vm1017_vm5, %v1018_v57, %v3069_v8  ;;  %v1290_v56 = vshrl.u32 %v2441_v45, %v1287_v5  ;;  %v1295_v51 = vshll.u32 %v2442_v48, %v1286_v9  ;;  %v1293_v63 = vshrl.u32 %v2442_v48, %v1287_v5 }
 0x21f   : > { %v3096_v41 = vsub.s32 %v1124_v60, %v1127_v42  ;;  %v1020_v37 = vadd.s32 %v1019_v26, %v1015_v24  ;;  %v1296_v22 = vshrl.u32 %v2437_v16, %v1287_v5  ;;  %v1298_v27 = vshll.u32 %v2437_v16, %v1286_v9 }
 0x220   : > { %v1291_v3 = vor.u32 %v1290_v56, %v1289_v44  ;;  %v1299_v7 = vshrl.u32 %v2438_v18, %v1287_v5  ;;  %v1301_v29 = vshll.u32 %v2438_v18, %v1286_v9  ;;  %v1294_v28 = vor.u32 %v1293_v63, %v1292_v15 }
 0x221   : > { %v1130_v35 = vsub.s32 0, %v3096_v41  ;;  %v1021_v0 = vadd.s32 536870912, %v1020_v37  ;;  %v1297_v46 = vor.u32 %v1296_v22, %v1295_v51  ;;  %v1302_v34 = vshrl.u32 %v2439_v31, %v1287_v5 }
 0x222   : > { %v1288_v10 = vshrl.u32 %v2440_v36, %v1287_v5  ;;  %v1300_v17 = vor.u32 %v1299_v7, %v1298_v27  ;;  %vm1304_vm6 = vcmp.lt.s32.totalorder %v1285_v23, 1  ;;  %vm1306_vm7 = vcmp.lt.s32.totalorder %v1285_v23, 3 }
 0x223   : > { %v2100_v43 = vmin.u32 %v1130_v35, %v3096_v41  ;;  %v1022_v60 = vshrl.u32 %v1021_v0, 30  ;;  %v1303_v30 = vor.u32 %v1302_v34, %v1301_v29  ;;  %vm1307_vm8 = vcmp.lt.s32.totalorder %v1285_v23, 4 }
 0x224   : > { %v1308_v47 = vsel %vm1304_vm6, %v1288_v10, %v1291_v3  ;;  %v1309_v33 = vsel %vm1307_vm8, %v1297_v46, 2102212464  ;;  %v1312_v49 = vsel %vm1304_vm6, %v1291_v3, %v1294_v28  ;;  %v1313_v4 = vsel %vm1307_vm8, %v1300_v17, 920167782 }
 0x225   : > { %v1132_v50 = vclz %v2100_v43  ;;  %v1023_v54 = vshll.u32 %v1022_v60, 30  ;;  %v1310_v21 = vsel %vm1306_vm7, %v1294_v28, %v1309_v33  ;;  %v1316_v8 = vsel %vm1304_vm6, %v1294_v28, %v1297_v46 }
 0x226   : > { %vm1305_vm9 = vcmp.lt.s32.totalorder %v1285_v23, 2  ;;  %v1314_v53 = vsel %vm1306_vm7, %v1297_v46, %v1313_v4  ;;  %v1317_v55 = vsel %vm1307_vm8, %v1303_v30, 1326507024  ;;  %v1178_v27 = vadd.s32 1, %v2103_v59 }
 0x227   : > { %v2101_v52 = vadd.s32 4294967294, %v1132_v50  ;;  %v3112_v9 = vsub.s32 %v1020_v37, %v1023_v54  ;;  %v1311_v24 = vsel %vm1305_vm9, %v1308_v47, %v1310_v21  ;;  %v1315_v42 = vsel %vm1305_vm9, %v1312_v49, %v1314_v53 }
 0x228   : > { %v1318_v57 = vsel %vm1306_vm7, %v1300_v17, %v1317_v55  ;;  %v3116_v44 = vmul.u32.u64.low %v3084_v32, %v1315_v42  ;;  %v3117_v15 = vmul.u32.u64.high %v3084_v32, %v1315_v42, %v3116_v44  ;;  %v1120_v37 = vadd.s32 %v3041_v13, %v3038_v25 }
 0x229   : > { %vm2102_vm10 = vcmp.lt.s32.totalorder %v2101_v52, 0  ;;  %v1319_v5 = vsel %vm1305_vm9, %v1316_v8, %v1318_v57  ;;  %v1026_v56 = vsub.s32 0, %v3112_v9  ;;  %v1327_v7 = vmul.u32 %v3084_v32, %v1311_v24 }
 0x22a   : > { %v1135_v26 = vsel %vm2102_vm10, 0, %v2101_v52  ;;  %v3122_v51 = vmul.u32.u64.low %v3084_v32, %v1319_v5  ;;  %v3123_v63 = vmul.u32.u64.high %v3084_v32, %v1319_v5, %v3122_v51  ;;  %v1176_v29 = vor.u32 8388608, %v3088_v61 }
 0x22b   : > { %v1136_v22 = vsub.s32 32, %v1135_v26  ;;  %v1140_v23 = vsub.s32 4294967266, %v1135_v26  ;;  %v1137_v35 = vshll.u32 %v3096_v41, %v1135_v26  ;;  %v2096_v3 = vmin.u32 %v1026_v56, %v3112_v9 }
 0x22c   : > { %v1330_v46 = vadd.s32 1, %v3117_v15  ;;  %vm1179_vm11 = vcmp.gt.s32.totalorder %v1178_v27, 0  ;;  %vm1329_vm12 = vc.u32 %v3123_v63, %v3116_v44  ;;  %v1046_v13 = vsub.s32 4, %v1022_v60 }
 0x22d   : > { %v1138_v0 = vshrl.u32 %v1120_v37, %v1136_v22  ;;  %v1141_v28 = vadd.s32 127, %v1140_v23  ;;  %v1028_v34 = vclz %v2096_v3  ;;  %v1180_v25 = vsel %vm1179_vm11, %v1178_v27, 0 }
 0x22e   : > { %vm962_vm13 = vcmp.lt.s32.totalorder %v2976_v2, 0  ;;  %v1331_v41 = vsel %vm1329_vm12, %v1330_v46, %v3117_v15  ;;  %v1016_v32 = vadd.s32 %v3068_v1, %v3074_v62  ;;  %v1182_v17 = vand.u32 31, %v1180_v25 }
 0x22f   : > { %v1139_v59 = vor.u32 %v1138_v0, %v1137_v35  ;;  %v1142_v43 = vshll.u32 %v1141_v28, 23  ;;  %v2097_v61 = vadd.s32 4294967294, %v1028_v34  ;;  %v1332_v10 = vadd.s32 %v1331_v41, %v1327_v7 }
 0x230   : > { %v3138_v50 = vshrl.u32 %v1180_v25, 5  ;;  %v3140_v47 = vshll.u32 %v1176_v29, 8  ;;  %v1150_v33 = vsub.s32 4, %v3079_v58  ;;  %v1183_v54 = vsub.s32 32, %v1182_v17 }
 0x231   : > { %v1143_v30 = vor.u32 4788187, %v1142_v43  ;;  %vm2098_vm14 = vcmp.lt.s32.totalorder %v2097_v61, 0  ;;  %v1333_v49 = vadd.s32 536870912, %v1332_v10  ;;  %v3145_v21 = vsel %vm962_vm13, %v1046_v13, %v1022_v60 }
 0x232   : > { %v1146_v8 = vcvt.s32.f32 %v1139_v59  ;;  %v1031_v1 = vsel %vm2098_vm14, 0, %v2097_v61  ;;  %v1185_v62 = vshll.u32 %v2440_v36, %v1182_v17  ;;  %v1188_v24 = vshll.u32 %v2441_v45, %v1182_v17 }
 0x233   : > { %v1144_v4 = vand.u32 2147483647, %v1143_v30  ;;  %v1032_v52 = vsub.s32 32, %v1031_v1  ;;  %v1036_v53 = vsub.s32 4294967266, %v1031_v1  ;;  %v3148_v55 = vshrl.u32 %v1333_v49, 30 }
 0x234   : > { %v1033_v57 = vshll.u32 %v3112_v9, %v1031_v1  ;;  %v1186_v5 = vshrl.u32 %v2441_v45, %v1183_v54  ;;  %v1189_v15 = vshrl.u32 %v2442_v48, %v1183_v54  ;;  %vm1066_vm15 = vcmp.lt.s32.totalorder %v2974_v6, 0 }
 0x235   : > { %v1147_v42 = vmul.f32 %v1146_v8, %v1144_v4  ;;  %v1034_v60 = vshrl.u32 %v1016_v32, %v1032_v52  ;;  %v1037_v26 = vadd.s32 127, %v1036_v53  ;;  %v1335_v56 = vshll.u32 %v3148_v55, 30 }
 0x236   : > { %v1192_v51 = vshrl.u32 %v2437_v16, %v1183_v54  ;;  %v1187_v37 = vor.u32 %v1186_v5, %v1185_v62  ;;  %v1190_v22 = vor.u32 %v1189_v15, %v1188_v24  ;;  %v1191_v23 = vshll.u32 %v2442_v48, %v1182_v17 }
 0x237   : > { %vm1200_vm0 = vcmp.lt.s32.totalorder %v3138_v50, 1  ;;  %v1035_v27 = vor.u32 %v1034_v60, %v1033_v57  ;;  %v1038_v9 = vshll.u32 %v1037_v26, 23  ;;  %v3159_v35 = vsub.s32 %v1332_v10, %v1335_v56 }
 0x238   : > { %v1194_v3 = vshll.u32 %v2437_v16, %v1182_v17  ;;  %v1193_v7 = vor.u32 %v1192_v51, %v1191_v23  ;;  %v1195_v29 = vshrl.u32 %v2438_v18, %v1183_v54  ;;  %v1197_v0 = vshll.u32 %v2438_v18, %v1182_v17 }
 0x239   : > { %v1198_v28 = vshrl.u32 %v2439_v31, %v1183_v54  ;;  %v1148_v46 = vxor.u32 2147483648, %v1147_v42  ;;  %v1039_v34 = vor.u32 4788187, %v1038_v9  ;;  %v1338_v25 = vsub.s32 0, %v3159_v35 }
 0x23a   : > { %v1184_v13 = vshrl.u32 %v2440_v36, %v1183_v54  ;;  %v1042_v59 = vcvt.s32.f32 %v1035_v27  ;;  %v1196_v43 = vor.u32 %v1195_v29, %v1194_v3  ;;  %vm1202_vm2 = vcmp.lt.s32.totalorder %v3138_v50, 3 }
 0x23b   : > { %v1199_v41 = vor.u32 %v1198_v28, %v1197_v0  ;;  %v1040_v32 = vand.u32 2147483647, %v1039_v34  ;;  %v2108_v61 = vmin.u32 %v1338_v25, %v3159_v35  ;;  %vm1203_vm3 = vcmp.lt.s32.totalorder %v3138_v50, 4 }
 0x23c   : > { %v1208_v10 = vsel %vm1200_vm0, %v1187_v37, %v1190_v22  ;;  %v1205_v17 = vsel %vm1203_vm3, %v1193_v7, 2102212464  ;;  %v1209_v30 = vsel %vm1203_vm3, %v1196_v43, 920167782  ;;  %v1212_v49 = vsel %vm1200_vm0, %v1190_v22, %v1193_v7 }
 0x23d   : > { %v1213_v4 = vsel %vm1203_vm3, %v1199_v41, 1326507024  ;;  %v1043_v54 = vmul.f32 %v1042_v59, %v1040_v32  ;;  %v1340_v8 = vclz %v2108_v61  ;;  %vm1201_vm4 = vcmp.lt.s32.totalorder %v3138_v50, 2 }
 0x23e   : > { %v1210_v1 = vsel %vm1202_vm2, %v1193_v7, %v1209_v30  ;;  %v1149_v62 = vsel %vm1066_vm15, %v1148_v46, %v1147_v42  ;;  %v1204_v52 = vsel %vm1200_vm0, %v1184_v13, %v1187_v37  ;;  %v1214_v24 = vsel %vm1202_vm2, %v1196_v43, %v1213_v4 }
 0x23f   : > { %v1211_v53 = vsel %vm1201_vm4, %v1208_v10, %v1210_v1  ;;  %v1044_v57 = vxor.u32 2147483648, %v1043_v54  ;;  %v2109_v5 = vadd.s32 4294967294, %v1340_v8  ;;  %v1206_v15 = vsel %vm1202_vm2, %v1190_v22, %v1205_v17 }
 0x240   : > { %v1215_v60 = vsel %vm1201_vm4, %v1212_v49, %v1214_v24  ;;  %v3194_v56 = vmul.u32.u64.low %v3140_v47, %v1211_v53  ;;  %v3195_v51 = vmul.u32.u64.high %v3140_v47, %v1211_v53, %v3194_v56  ;;  %vm3202_vm6 = vcmp.le.f32.partialorder %v960_v38, 0.7853982 }
 0x241   : > { %v3190_v26 = vmul.u32.u64.low %v3140_v47, %v1215_v60  ;;  %v3191_v42 = vmul.u32.u64.high %v3140_v47, %v1215_v60, %v3190_v26  ;;  %v1045_v37 = vsel %vm962_vm13, %v1044_v57, %v1043_v54  ;;  %vm2110_vm5 = vcmp.lt.s32.totalorder %v2109_v5, 0 }
 0x242   : > { %v1343_v23 = vsel %vm2110_vm5, 0, %v2109_v5  ;;  %v1207_v27 = vsel %vm1201_vm4, %v1204_v52, %v1206_v15  ;;  %v1048_v9 = vsel %vm3202_vm6, %v2976_v2, %v1045_v37  ;;  %vm3213_vm7 = vcmp.le.f32.partialorder %v1064_v19, 0.7853982 }
 0x243   : > { %v1348_v7 = vsub.s32 4294967266, %v1343_v23  ;;  %v1049_v38 = vsel %vm3202_vm6, 0, %v3145_v21  ;;  %2339 = vcosq.f32 %v1048_v9  ;;  %v1152_v50 = vsel %vm3213_vm7, %v2974_v6, %v1149_v62 }
 0x244   : > { %vm1225_vm8 = vc.u32 %v3191_v42, %v3194_v56  ;;  %v1226_v29 = vadd.s32 1, %v3195_v51  ;;  %2341 = vsinq.f32 %v1048_v9  ;;  %v1151_v19 = vsel %vm1066_vm15, %v1150_v33, %v3079_v58 }
 0x245   : > { %v1344_v0 = vsub.s32 32, %v1343_v23  ;;  %v1349_v28 = vadd.s32 127, %v1348_v7  ;;  %v1223_v21 = vmul.u32 %v3140_v47, %v1207_v27  ;;  %v1328_v46 = vadd.s32 %v3116_v44, %v3123_v63 }
 0x246   : > { %v1227_v34 = vsel %vm1225_vm8, %v1226_v29, %v3195_v51  ;;  %v1053_v25 = vadd.s32 3, %v1049_v38  ;;  %2343 = vcosq.f32 %v1152_v50  ;;  %v1153_v43 = vsel %vm3213_vm7, 0, %v1151_v19 }
 0x247   : > { %v1350_v13 = vshll.u32 %v1349_v28, 23  ;;  %v1228_v59 = vadd.s32 %v1227_v34, %v1223_v21  ;;  %2345 = vsinq.f32 %v1152_v50  ;;  %v1346_v41 = vshrl.u32 %v1328_v46, %v1344_v0 }
 0x248   : > { %v1157_v58 = vadd.s32 3, %v1153_v43  ;;  %v1345_v33 = vshll.u32 %v3159_v35, %v1343_v23  ;;  %v1054_v10 = vand.u32 3, %v1053_v25  ;;  %vm1052_vm12 = vweird.f32 %v2976_v2 }
 0x249   : > { %v1229_v32 = vadd.s32 536870912, %v1228_v59  ;;  %v1351_v61 = vor.u32 4788187, %v1350_v13  ;;  %vm1156_vm0 = vweird.f32 %v2974_v6  ;;  %vm1274_vm3 = vcmp.lt.s32.totalorder %v2984_v40, 0 }
 0x24a   : > { %v1347_v63 = vor.u32 %v1346_v41, %v1345_v33  ;;  %v1158_v4 = vand.u32 3, %v1157_v58  ;;  %vm1059_vm9 = vcmp.eq.s32.totalorder %v1054_v10, 2  ;;  %vm1055_vm10 = vcmp.lt.s32.totalorder %v1054_v10, 2 }
 0x24b   : > { %v3238_v47 = vshrl.u32 %v1229_v32, 30  ;;  %v1352_v54 = vand.u32 2147483647, %v1351_v61  ;;  %vm1056_vm11 = vcmp.eq.s32.totalorder %v1054_v10, 0  ;;  %v1224_v19 = vadd.s32 %v3194_v56, %v3191_v42 }
 0x24c   : > { %v1354_v53 = vcvt.s32.f32 %v1347_v63  ;;  %vm1163_vm13 = vcmp.eq.s32.totalorder %v1158_v4, 2  ;;  %vm1160_vm14 = vcmp.eq.s32.totalorder %v1158_v4, 0  ;;  %vm1159_vm15 = vcmp.lt.s32.totalorder %v1158_v4, 2 }
 0x24d   : > { %v2340_v44 = vpop.eup %2339  ;;  %v1231_v17 = vshll.u32 %v3238_v47, 30  ;;  %vm3250_vm4 = vcmp.le.f32.partialorder %v1272_v20, 0.7853982  ;;  %v1358_v43 = vsub.s32 4, %v3148_v55  ;;  %v1254_v58 = vsub.s32 4, %v3238_v47 }
 0x24e   : > { %v2342_v30 = vpop.eup %2341  ;;  %v1060_v49 = vxor.u32 2147483648, %v2340_v44  ;;  %v1355_v26 = vmul.f32 %v1354_v53, %v1352_v54  ;;  %vm1170_vm5 = vcmp.lt.s32.totalorder %v2989_v11, 0  ;;  %vm1169_vm6 = vcmp.le.f32.partialorder %v1168_v39, 0.7853982 }
 0x24f   : > { %v1232_v8 = vsub.s32 %v1228_v59, %v1231_v17  ;;  %v1057_v1 = vxor.u32 2147483648, %v2342_v30  ;;  %v1359_v20 = vsel %vm1274_vm3, %v1358_v43, %v3148_v55 }
 0x250   : > { %v2344_v62 = vpop.eup %2343  ;;  %v1061_v52 = vsel %vm1059_vm9, %v1060_v49, %v2342_v30  ;;  %v1356_v7 = vxor.u32 2147483648, %v1355_v26  ;;  %v1361_v61 = vsel %vm3250_vm4, 0, %v1359_v20 }
 0x251   : > { %v2346_v35 = vpop.eup %2345  ;;  %v1234_v24 = vsub.s32 0, %v1232_v8  ;;  %v1058_v57 = vsel %vm1056_vm11, %v2340_v44, %v1057_v1  ;;  %v1164_v5 = vxor.u32 2147483648, %v2344_v62  ;;  %v1255_v44 = vsel %vm1170_vm5, %v1254_v58, %v3238_v47 }
 0x252   : > { %v1062_v15 = vsel %vm1055_vm10, %v1058_v57, %v1061_v52  ;;  %v1161_v60 = vxor.u32 2147483648, %v2346_v35  ;;  %v1357_v29 = vsel %vm1274_vm3, %v1356_v7, %v1355_v26  ;;  %v1365_v17 = vadd.s32 3, %v1361_v61 }
 0x253   : > { %v2104_v51 = vmin.u32 %v1234_v24, %v1232_v8  ;;  %v1165_v37 = vsel %vm1163_vm13, %v1164_v5, %v2346_v35  ;;  %v1063_v22 = vsel %vm1052_vm12, nan, %v1062_v15  ;;  %v1360_v25 = vsel %vm3250_vm4, %v2984_v40, %v1357_v29 }
 0x254   : > { %v1162_v23 = vsel %vm1160_vm14, %v2344_v62, %v1161_v60  ;;  %2347 = vcosq.f32 %v1360_v25  ;;  %v1257_v49 = vsel %vm1169_vm6, 0, %v1255_v44  ;;  %v1366_v4 = vand.u32 3, %v1365_v17 }
 0x255   : > { %v1236_v27 = vclz %v2104_v51  ;;  %v1166_v9 = vsel %vm1159_vm15, %v1162_v23, %v1165_v37  ;;  %2349 = vsinq.f32 %v1360_v25  ;;  %v1261_v54 = vadd.s32 3, %v1257_v49  ;;  %v1378_v23 = vld [vmem:[%s3622_s5 + $0x10] sm:$0xff] }
 0x256   : > { %v1167_v3 = vsel %vm1156_vm0, nan, %v1166_v9  ;;  %vm1368_vm7 = vcmp.eq.s32.totalorder %v1366_v4, 0  ;;  %vm1371_vm8 = vcmp.eq.s32.totalorder %v1366_v4, 2  ;;  %vm1367_vm9 = vcmp.lt.s32.totalorder %v1366_v4, 2 }
 0x257   : > { %v2105_v38 = vadd.s32 4294967294, %v1236_v27  ;;  %v2203_v50 = vpack.c.bf16 %v1167_v3, %v1063_v22  ;;  %v1262_v62 = vand.u32 3, %v1261_v54  ;;  %vm1364_vm12 = vweird.f32 %v2984_v40  ;;  %v1377_v22 = vld [vmem:[%s3622_s5 + $0x8] sm:$0xff]  ;;  %v1379_v40 = vld [vmem:[%s3622_s5 + $0x18] sm:$0xff]  ;;  %v1392_v27 = vpop.permute.xlu1 %1391  ;;  %v1387_v3 = vpop.permute.xlu0 %1386 }
 0x258   : > { %vm1260_vm14 = vweird.f32 %v2989_v11 }
 0x259   : > { %vm2106_vm2 = vcmp.lt.s32.totalorder %v2105_v38, 0  ;;  %2204 = vmatprep.subr.bf16.mxu1 %v2203_v50  ;;  %vm1267_vm10 = vcmp.eq.s32.totalorder %v1262_v62, 2  ;;  %vm1264_vm11 = vcmp.eq.s32.totalorder %v1262_v62, 0  ;;  %vm1263_vm13 = vcmp.lt.s32.totalorder %v1262_v62, 2 }
 0x25a   : > { %v1239_v2 = vsel %vm2106_vm2, 0, %v2105_v38  ;;  %2206 = vmatpush3.bf16.msra.mxu1 %v2203_v50 }
 0x25b   : > { %v1240_v0 = vsub.s32 32, %v1239_v2  ;;  %v1244_v28 = vsub.s32 4294967266, %v1239_v2  ;;  %v1241_v21 = vshll.u32 %v1232_v8, %v1239_v2 }
 0x25d   : > { %v1242_v46 = vshrl.u32 %v1224_v19, %v1240_v0  ;;  %v1245_v34 = vadd.s32 127, %v1244_v28  ;;  %v1402_v19 = vpop.permute.xlu1 %1401 }
 0x25e   : > { %v2348_v30 = vpop.eup %2347 }
 0x25f   : > { %v1243_v13 = vor.u32 %v1242_v46, %v1241_v21  ;;  %v1246_v59 = vshll.u32 %v1245_v34, 23  ;;  %v2350_v55 = vpop.eup %2349  ;;  %v1372_v1 = vxor.u32 2147483648, %v2348_v30 }
 0x260   : > { %v1369_v8 = vxor.u32 2147483648, %v2350_v55 }
 0x261   : > { %v1247_v42 = vor.u32 4788187, %v1246_v59  ;;  %v1250_v41 = vcvt.s32.f32 %v1243_v13  ;;  %v1373_v39 = vsel %vm1371_vm8, %v1372_v1, %v2350_v55 }
 0x262   : > { %v1370_v52 = vsel %vm1368_vm7, %v2348_v30, %v1369_v8 }
 0x263   : > { %v1248_v56 = vand.u32 2147483647, %v1247_v42  ;;  %v1374_v24 = vsel %vm1367_vm9, %v1370_v52, %v1373_v39  ;;  %v1397_v42 = vpop.permute.xlu0 %1396 }
 0x264   : > { %v1375_v60 = vsel %vm1364_vm12, nan, %v1374_v24 }
 0x265   : > { %v1251_v32 = vmul.f32 %v1250_v41, %v1248_v56 }
 0x267   : > { %v1252_v33 = vxor.u32 2147483648, %v1251_v32 }
 0x269   : > { %v1253_v10 = vsel %vm1170_vm5, %v1252_v33, %v1251_v32 }
 0x26a   : > { %v1256_v63 = vsel %vm1169_vm6, %v2989_v11, %v1253_v10  ;;  %v2443_v11 = vmov 0.0|0.0  }
 0x26b   : > { %2351 = vcosq.f32 %v1256_v63  ;;  %2211 = vmatprep.subr.bf16.mxu0 %v2443_v11 }
 0x26c   : > { %2353 = vsinq.f32 %v1256_v63 }
 0x275   : > { %v2352_v35 = vpop.eup %2351 }
 0x276   : > { %v2354_v47 = vpop.eup %2353  ;;  %v1268_v53 = vxor.u32 2147483648, %v2352_v35 }
 0x277   : > { %v1265_v57 = vxor.u32 2147483648, %v2354_v47 }
 0x278   : > { %v1269_v5 = vsel %vm1267_vm10, %v1268_v53, %v2354_v47 }
 0x279   : > { %v1266_v15 = vsel %vm1264_vm11, %v2352_v35, %v1265_v57 }
 0x27a   : > { %v1270_v26 = vsel %vm1263_vm13, %v1266_v15, %v1269_v5 }
 0x27b   : > { %v1271_v51 = vsel %vm1260_vm14, nan, %v1270_v26 }
 0x27c   : > { %v2207_v37 = vpack.c.bf16 %v1375_v60, %v1271_v51 }
 0x27e   : > { %2208 = vmatprep.subr.bf16.mxu1 %v2207_v37 }
 0x27f   : > { %2210 = vmatpush3.bf16.msra.mxu1 %v2207_v37 }
 0x282   : > { %2179 = vmatmul.mubr.msk.f32.vlgmr.msra.gmra.mrb[0].mxu1 %vm862_vm1, %v1377_v22 }
 0x283   : > { %2181 = vmatprep.mubr.msk.f32.mxu1 %vm862_vm1, %v1378_v23 }
 0x286   : > { %2182 = vmatmul.mubr.msk.f32.gmra.mrb[2].mxu1 %vm862_vm1, %v1379_v40 }
 0x355   : > { %v2180_v9 = vpop.f32.mrb[0].mxu1 }
 0x356   : > { %v3284_v7 = vadd.f32 %v2180_v9, %v1392_v27  ;;  %v1482_v38 = vpop.f32.mrb[1].mxu1 }
 0x357   : > { %v3286_v50 = vadd.f32 %v1482_v38, %v1387_v3 }
 0x358   : > { %v1605_v2 = vand.u32 2147483647, %v3284_v7  ;;  %v1608_v29 = vand.u32 2139095040, %v3284_v7  ;;  %vm1607_vm13 = vcmp.lt.s32.totalorder %v3284_v7, 0 }
 0x359   : > { %v1501_v0 = vand.u32 2147483647, %v3286_v50  ;;  %v1504_v28 = vand.u32 2139095040, %v3286_v50  ;;  %v2183_v6 = vpop.f32.mrb[2].mxu1 }
 0x35a   : > { %v1609_v21 = vshrl.u32 %v1608_v29, 23  ;;  %v1612_v46 = vand.u32 8388607, %v1605_v2  ;;  %v3294_v34 = vadd.f32 %v2183_v6, %v1402_v19  ;;  %v1492_v25 = vpop.f32.mrb[3].mxu1 }
 0x35b   : > { %v1505_v13 = vshrl.u32 %v1504_v28, 23  ;;  %v1508_v59 = vand.u32 8388607, %v1501_v0  ;;  %v3299_v58 = vadd.f32 %v1492_v25, %v1397_v42 }
 0x35c   : > { %v2119_v43 = vadd.s32 4294967169, %v1609_v21  ;;  %v1816_v41 = vand.u32 2139095040, %v3294_v34  ;;  %v1613_v20 = vor.u32 8388608, %v1612_v46  ;;  %v1813_v10 = vand.u32 2147483647, %v3294_v34 }
 0x35d   : > { %v2115_v56 = vadd.s32 4294967169, %v1505_v13  ;;  %v1509_v33 = vor.u32 8388608, %v1508_v59  ;;  %v1709_v4 = vand.u32 2147483647, %v3299_v58 }
 0x35e   : > { %v1615_v32 = vadd.s32 1, %v2119_v43  ;;  %v1817_v44 = vshrl.u32 %v1816_v41, 23  ;;  %v3303_v54 = vshll.u32 %v1613_v20, 8  ;;  %v3311_v62 = vand.u32 8388607, %v1813_v10 }
 0x35f   : > { %v1511_v61 = vadd.s32 1, %v2115_v56  ;;  %v3307_v1 = vshll.u32 %v1509_v33, 8 }
 0x360   : > { %vm1616_vm15 = vcmp.gt.s32.totalorder %v1615_v32, 0  ;;  %v2127_v17 = vadd.s32 4294967169, %v1817_v44 }
 0x361   : > { %v1617_v63 = vsel %vm1616_vm15, %v1615_v32, 0  ;;  %vm1512_vm0 = vcmp.gt.s32.totalorder %v1511_v61, 0 }
 0x362   : > { %v1618_v30 = vshrl.u32 %v1617_v63, 5  ;;  %v1619_v55 = vand.u32 31, %v1617_v63  ;;  %v1513_v49 = vsel %vm1512_vm0, %v1511_v61, 0  ;;  %v3314_v47 = vadd.s32 1, %v2127_v17 }
 0x363   : > { %v3305_v8 = vshrl.u32 %v1513_v49, 5  ;;  %v1515_v35 = vand.u32 31, %v1513_v49 }
 0x364   : > { %v1620_v52 = vsub.s32 32, %v1619_v55  ;;  %v1622_v39 = vshll.u32 %v2440_v36, %v1619_v55  ;;  %v1625_v53 = vshll.u32 %v2441_v45, %v1619_v55  ;;  %v1628_v24 = vshll.u32 %v2442_v48, %v1619_v55 }
 0x365   : > { %v1631_v57 = vshll.u32 %v2437_v16, %v1619_v55  ;;  %v1634_v5 = vshll.u32 %v2438_v18, %v1619_v55  ;;  %vm1637_vm2 = vcmp.lt.s32.totalorder %v1618_v30, 1  ;;  %vm1638_vm3 = vcmp.lt.s32.totalorder %v1618_v30, 2 }
 0x366   : > { %v1623_v15 = vshrl.u32 %v2441_v45, %v1620_v52  ;;  %v1626_v60 = vshrl.u32 %v2442_v48, %v1620_v52  ;;  %v1629_v26 = vshrl.u32 %v2437_v16, %v1620_v52  ;;  %v1621_v51 = vshrl.u32 %v2440_v36, %v1620_v52 }
 0x367   : > { %v1632_v37 = vshrl.u32 %v2438_v18, %v1620_v52  ;;  %v1635_v22 = vshrl.u32 %v2439_v31, %v1620_v52  ;;  %v1516_v9 = vsub.s32 32, %v1515_v35  ;;  %vm1639_vm4 = vcmp.lt.s32.totalorder %v1618_v30, 3 }
 0x368   : > { %v1624_v23 = vor.u32 %v1623_v15, %v1622_v39  ;;  %v1627_v40 = vor.u32 %v1626_v60, %v1625_v53  ;;  %v1630_v27 = vor.u32 %v1629_v26, %v1628_v24  ;;  %vm1640_vm5 = vcmp.lt.s32.totalorder %v1618_v30, 4 }
 0x369   : > { %v1633_v3 = vor.u32 %v1632_v37, %v1631_v57  ;;  %v1636_v38 = vor.u32 %v1635_v22, %v1634_v5  ;;  %v1518_v13 = vshll.u32 %v2440_v36, %v1515_v35  ;;  %v1519_v42 = vshrl.u32 %v2441_v45, %v1516_v9 }
 0x36a   : > { %v1641_v29 = vsel %vm1637_vm2, %v1621_v51, %v1624_v23  ;;  %v1642_v19 = vsel %vm1640_vm5, %v1630_v27, 2102212464  ;;  %v1645_v28 = vsel %vm1637_vm2, %v1624_v23, %v1627_v40  ;;  %v1649_v6 = vsel %vm1637_vm2, %v1627_v40, %v1630_v27 }
 0x36b   : > { %v1643_v21 = vsel %vm1639_vm4, %v1627_v40, %v1642_v19  ;;  %v1646_v46 = vsel %vm1640_vm5, %v1633_v3, 920167782  ;;  %v1650_v25 = vsel %vm1640_vm5, %v1636_v38, 1326507024  ;;  %v1521_v56 = vshll.u32 %v2441_v45, %v1515_v35 }
 0x36c   : > { %v1647_v59 = vsel %vm1639_vm4, %v1630_v27, %v1646_v46  ;;  %v1651_v43 = vsel %vm1639_vm4, %v1633_v3, %v1650_v25  ;;  %v1644_v41 = vsel %vm1638_vm3, %v1641_v29, %v1643_v21  ;;  %v1522_v33 = vshrl.u32 %v2442_v48, %v1516_v9 }
 0x36d   : > { %v1648_v20 = vsel %vm1638_vm3, %v1645_v28, %v1647_v59  ;;  %v1652_v32 = vsel %vm1638_vm3, %v1649_v6, %v1651_v43  ;;  %v1520_v55 = vor.u32 %v1519_v42, %v1518_v13  ;;  %v1524_v52 = vshll.u32 %v2442_v48, %v1515_v35 }
 0x36e   : > { %v3337_v61 = vmul.u32.u64.low %v3303_v54, %v1652_v32  ;;  %v3338_v44 = vmul.u32.u64.high %v3303_v54, %v1652_v32, %v3337_v61  ;;  %v3341_v63 = vmul.u32.u64.low %v3303_v54, %v1648_v20  ;;  %v3342_v17 = vmul.u32.u64.high %v3303_v54, %v1648_v20, %v3341_v63 }
 0x36f   : > { %v1523_v49 = vor.u32 %v1522_v33, %v1521_v56  ;;  %v1525_v39 = vshrl.u32 %v2437_v16, %v1516_v9  ;;  %v1517_v53 = vshrl.u32 %v2440_v36, %v1516_v9  ;;  %v1527_v30 = vshll.u32 %v2437_v16, %v1515_v35 }
 0x370   : > { %v1528_v24 = vshrl.u32 %v2438_v18, %v1516_v9  ;;  %v1531_v57 = vshrl.u32 %v2439_v31, %v1516_v9  ;;  %v1660_v5 = vmul.u32 %v3303_v54, %v1644_v41  ;;  %v1530_v60 = vshll.u32 %v2438_v18, %v1515_v35 }
 0x371   : > { %v1526_v15 = vor.u32 %v1525_v39, %v1524_v52  ;;  %vm1533_vm6 = vcmp.lt.s32.totalorder %v3305_v8, 1  ;;  %vm1662_vm7 = vc.u32 %v3338_v44, %v3341_v63  ;;  %v1663_v26 = vadd.s32 1, %v3342_v17 }
 0x372   : > { %v1529_v51 = vor.u32 %v1528_v24, %v1527_v30  ;;  %vm1534_vm8 = vcmp.lt.s32.totalorder %v3305_v8, 2  ;;  %v1532_v37 = vor.u32 %v1531_v57, %v1530_v60  ;;  %vm1535_vm9 = vcmp.lt.s32.totalorder %v3305_v8, 3 }
 0x373   : > { %vm1536_vm10 = vcmp.lt.s32.totalorder %v3305_v8, 4  ;;  %v1541_v22 = vsel %vm1533_vm6, %v1520_v55, %v1523_v49  ;;  %v1664_v54 = vsel %vm1662_vm7, %v1663_v26, %v3342_v17  ;;  %v1545_v35 = vsel %vm1533_vm6, %v1523_v49, %v1526_v15 }
 0x374   : > { %v1538_v23 = vsel %vm1536_vm10, %v1526_v15, 2102212464  ;;  %v1542_v40 = vsel %vm1536_vm10, %v1529_v51, 920167782  ;;  %v1665_v27 = vadd.s32 %v1664_v54, %v1660_v5  ;;  %v1537_v9 = vsel %vm1533_vm6, %v1517_v53, %v1520_v55 }
 0x375   : > { %v1543_v3 = vsel %vm1535_vm9, %v1526_v15, %v1542_v40  ;;  %v1546_v38 = vsel %vm1536_vm10, %v1532_v37, 1326507024  ;;  %v1539_v29 = vsel %vm1535_vm9, %v1523_v49, %v1538_v23  ;;  %vm1824_vm11 = vcmp.gt.s32.totalorder %v3314_v47, 0 }
 0x376   : > { %v1544_v19 = vsel %vm1534_vm8, %v1541_v22, %v1543_v3  ;;  %v1547_v28 = vsel %vm1535_vm9, %v1529_v51, %v1546_v38  ;;  %v1666_v6 = vadd.s32 536870912, %v1665_v27  ;;  %v1821_v43 = vor.u32 8388608, %v3311_v62 }
 0x377   : > { %v1548_v21 = vsel %vm1534_vm8, %v1545_v35, %v1547_v28  ;;  %v3365_v46 = vmul.u32.u64.low %v3307_v1, %v1544_v19  ;;  %v3366_v25 = vmul.u32.u64.high %v3307_v1, %v1544_v19, %v3365_v46  ;;  %v1825_v42 = vsel %vm1824_vm11, %v3314_v47, 0 }
 0x378   : > { %v3370_v13 = vmul.u32.u64.low %v3307_v1, %v1548_v21  ;;  %v3371_v59 = vmul.u32.u64.high %v3307_v1, %v1548_v21, %v3370_v13  ;;  %v1667_v56 = vshrl.u32 %v1666_v6, 30  ;;  %v1540_v41 = vsel %vm1534_vm8, %v1537_v9, %v1539_v29 }
 0x379   : > { %v1827_v20 = vand.u32 31, %v1825_v42  ;;  %v1712_v32 = vand.u32 2139095040, %v3299_v58  ;;  %v1559_v61 = vadd.s32 1, %v3366_v25  ;;  %v1556_v55 = vmul.u32 %v3307_v1, %v1540_v41 }
 0x37a   : > { %v1668_v33 = vshll.u32 %v1667_v56, 30  ;;  %vm1558_vm12 = vc.u32 %v3371_v59, %v3365_v46  ;;  %v3384_v62 = vand.u32 8388607, %v1709_v4  ;;  %v3389_v49 = vshll.u32 %v1821_v43, 8 }
 0x37b   : > { %v1828_v17 = vsub.s32 32, %v1827_v20  ;;  %v1560_v8 = vsel %vm1558_vm12, %v1559_v61, %v3366_v25  ;;  %v1713_v52 = vshrl.u32 %v1712_v32, 23  ;;  %v1830_v53 = vshll.u32 %v2440_v36, %v1827_v20 }
 0x37c   : > { %v3386_v47 = vsub.s32 %v1665_v27, %v1668_v33  ;;  %v1561_v39 = vadd.s32 %v1560_v8, %v1556_v55  ;;  %v1661_v24 = vadd.s32 %v3341_v63, %v3338_v44  ;;  %v1833_v5 = vshll.u32 %v2441_v45, %v1827_v20 }
 0x37d   : > { %v1831_v1 = vshrl.u32 %v2441_v45, %v1828_v17  ;;  %v1834_v30 = vshrl.u32 %v2442_v48, %v1828_v17  ;;  %v1837_v15 = vshrl.u32 %v2437_v16, %v1828_v17  ;;  %v1826_v26 = vshrl.u32 %v1825_v42, 5 }
 0x37e   : > { %v1671_v57 = vsub.s32 0, %v3386_v47  ;;  %v1562_v60 = vadd.s32 536870912, %v1561_v39  ;;  %v1836_v37 = vshll.u32 %v2442_v48, %v1827_v20  ;;  %v1839_v23 = vshll.u32 %v2437_v16, %v1827_v20 }
 0x37f   : > { %v1832_v51 = vor.u32 %v1831_v1, %v1830_v53  ;;  %v1835_v54 = vor.u32 %v1834_v30, %v1833_v5  ;;  %v1840_v40 = vshrl.u32 %v2438_v18, %v1828_v17  ;;  %v1691_v35 = vsub.s32 4, %v1667_v56 }
 0x380   : > { %v2120_v22 = vmin.u32 %v1671_v57, %v3386_v47  ;;  %v3403_v44 = vshrl.u32 %v1562_v60, 30  ;;  %v1838_v63 = vor.u32 %v1837_v15, %v1836_v37  ;;  %v1843_v27 = vshrl.u32 %v2439_v31, %v1828_v17 }
 0x381   : > { %v1829_v3 = vshrl.u32 %v2440_v36, %v1828_v17  ;;  %v1841_v38 = vor.u32 %v1840_v40, %v1839_v23  ;;  %v1842_v29 = vshll.u32 %v2438_v18, %v1827_v20  ;;  %vm1845_vm14 = vcmp.lt.s32.totalorder %v1826_v26, 1 }
 0x382   : > { %v1673_v9 = vclz %v2120_v22  ;;  %v1564_v19 = vshll.u32 %v3403_v44, 30  ;;  %vm1847_vm15 = vcmp.lt.s32.totalorder %v1826_v26, 3  ;;  %vm1848_vm0 = vcmp.lt.s32.totalorder %v1826_v26, 4 }
 0x383   : > { %v1844_v6 = vor.u32 %v1843_v27, %v1842_v29  ;;  %v1853_v21 = vsel %vm1845_vm14, %v1832_v51, %v1835_v54  ;;  %v1854_v25 = vsel %vm1848_vm0, %v1841_v38, 920167782  ;;  %vm1846_vm2 = vcmp.lt.s32.totalorder %v1826_v26, 2 }
 0x384   : > { %v2121_v28 = vadd.s32 4294967294, %v1673_v9  ;;  %v3411_v13 = vsub.s32 %v1561_v39, %v1564_v19  ;;  %v1850_v43 = vsel %vm1848_vm0, %v1838_v63, 2102212464  ;;  %v1855_v42 = vsel %vm1847_vm15, %v1838_v63, %v1854_v25 }
 0x385   : > { %v1692_v41 = vsel %vm1607_vm13, %v1691_v35, %v1667_v56  ;;  %v1856_v20 = vsel %vm1846_vm2, %v1853_v21, %v1855_v42  ;;  %v2123_v32 = vadd.s32 4294967169, %v1713_v52  ;;  %v1849_v17 = vsel %vm1845_vm14, %v1829_v3, %v1832_v51 }
 0x386   : > { %vm2122_vm3 = vcmp.lt.s32.totalorder %v2121_v28, 0  ;;  %v1567_v61 = vsub.s32 0, %v3411_v13  ;;  %v1857_v55 = vsel %vm1845_vm14, %v1835_v54, %v1838_v63  ;;  %v1851_v53 = vsel %vm1847_vm15, %v1835_v54, %v1850_v43 }
 0x387   : > { %v1676_v33 = vsel %vm2122_vm3, 0, %v2121_v28  ;;  %v1858_v1 = vsel %vm1848_vm0, %v1844_v6, 1326507024  ;;  %vm1503_vm4 = vcmp.lt.s32.totalorder %v3286_v50, 0  ;;  %v1719_v23 = vadd.s32 1, %v2123_v32 }
 0x388   : > { %v1677_v8 = vsub.s32 32, %v1676_v33  ;;  %v1681_v39 = vsub.s32 4294967266, %v1676_v33  ;;  %v2116_v56 = vmin.u32 %v1567_v61, %v3411_v13  ;;  %v1859_v30 = vsel %vm1847_vm15, %v1841_v38, %v1858_v1 }
 0x389   : > { %v3427_v52 = vmul.u32.u64.low %v3389_v49, %v1856_v20  ;;  %v3428_v57 = vmul.u32.u64.high %v3389_v49, %v1856_v20, %v3427_v52  ;;  %v1678_v5 = vshll.u32 %v3386_v47, %v1676_v33  ;;  %v1860_v51 = vsel %vm1846_vm2, %v1857_v55, %v1859_v30 }
 0x38a   : > { %v1679_v15 = vshrl.u32 %v1661_v24, %v1677_v8  ;;  %v1682_v60 = vadd.s32 127, %v1681_v39  ;;  %v1569_v37 = vclz %v2116_v56  ;;  %vm3439_vm5 = vcmp.le.f32.partialorder %v1605_v2, 0.7853982 }
 0x38b   : > { %v3434_v22 = vmul.u32.u64.low %v3389_v49, %v1860_v51  ;;  %v3435_v54 = vmul.u32.u64.high %v3389_v49, %v1860_v51, %v3434_v22  ;;  %v1852_v47 = vsel %vm1846_vm2, %v1849_v17, %v1851_v53  ;;  %v1871_v27 = vadd.s32 1, %v3428_v57 }
 0x38c   : > { %v1680_v35 = vor.u32 %v1679_v15, %v1678_v5  ;;  %v1683_v63 = vshll.u32 %v1682_v60, 23  ;;  %v2117_v24 = vadd.s32 4294967294, %v1569_v37  ;;  %v1717_v9 = vor.u32 8388608, %v3384_v62 }
 0x38d   : > { %vm1720_vm6 = vcmp.gt.s32.totalorder %v1719_v23, 0  ;;  %v1694_v38 = vsel %vm3439_vm5, 0, %v1692_v41  ;;  %v1587_v29 = vsub.s32 4, %v3403_v44  ;;  %v1868_v28 = vmul.u32 %v3389_v49, %v1852_v47 }
 0x38e   : > { %v1684_v3 = vor.u32 4788187, %v1683_v63  ;;  %v1721_v2 = vsel %vm1720_vm6, %v1719_v23, 0  ;;  %v1687_v19 = vcvt.s32.f32 %v1680_v35  ;;  %vm2118_vm7 = vcmp.lt.s32.totalorder %v2117_v24, 0 }
 0x38f   : > { %vm1870_vm8 = vc.u32 %v3435_v54, %v3427_v52  ;;  %v1572_v6 = vsel %vm2118_vm7, 0, %v2117_v24  ;;  %v1723_v62 = vand.u32 31, %v1721_v2  ;;  %v1557_v25 = vadd.s32 %v3365_v46, %v3371_v59 }
 0x390   : > { %v1685_v26 = vand.u32 2147483647, %v1684_v3  ;;  %v1872_v21 = vsel %vm1870_vm8, %v1871_v27, %v3428_v57  ;;  %v1573_v43 = vsub.s32 32, %v1572_v6  ;;  %v1577_v42 = vsub.s32 4294967266, %v1572_v6 }
 0x391   : > { %v1873_v41 = vadd.s32 %v1872_v21, %v1868_v28  ;;  %v3455_v32 = vadd.s32 3, %v1694_v38  ;;  %vm3459_vm9 = vcmp.le.f32.partialorder %v1501_v0, 0.7853982  ;;  %v3466_v33 = vsel %vm1503_vm4, %v1587_v29, %v3403_v44 }
 0x392   : > { %v1688_v20 = vmul.f32 %v1687_v19, %v1685_v26  ;;  %v1724_v61 = vsub.s32 32, %v1723_v62  ;;  %v1574_v46 = vshll.u32 %v3411_v13, %v1572_v6  ;;  %v1575_v59 = vshrl.u32 %v1557_v25, %v1573_v43 }
 0x393   : > { %v1578_v17 = vadd.s32 127, %v1577_v42  ;;  %v1874_v55 = vadd.s32 536870912, %v1873_v41  ;;  %v3469_v39 = vshrl.u32 %v1721_v2, 5  ;;  %v1726_v53 = vshll.u32 %v2440_v36, %v1723_v62 }
 0x394   : > { %v1689_v8 = vxor.u32 2147483648, %v1688_v20  ;;  %v1727_v0 = vshrl.u32 %v2441_v45, %v1724_v61  ;;  %v1576_v1 = vor.u32 %v1575_v59, %v1574_v46  ;;  %v1733_v44 = vshrl.u32 %v2437_v16, %v1724_v61 }
 0x395   : > { %v1579_v56 = vshll.u32 %v1578_v17, 23  ;;  %v3473_v30 = vshrl.u32 %v1874_v55, 30  ;;  %v1729_v13 = vshll.u32 %v2441_v45, %v1723_v62  ;;  %v1730_v5 = vshrl.u32 %v2442_v48, %v1724_v61 }
 0x396   : > { %v1690_v57 = vsel %vm1607_vm13, %v1689_v8, %v1688_v20  ;;  %v1732_v15 = vshll.u32 %v2442_v48, %v1723_v62  ;;  %v1728_v22 = vor.u32 %v1727_v0, %v1726_v53  ;;  %v1583_v23 = vcvt.s32.f32 %v1576_v1 }
 0x397   : > { %v1693_v60 = vsel %vm3439_vm5, %v3284_v7, %v1690_v57  ;;  %v1580_v51 = vor.u32 4788187, %v1579_v56  ;;  %v1876_v37 = vshll.u32 %v3473_v30, 30  ;;  %v1735_v35 = vshll.u32 %v2437_v16, %v1723_v62 }
 0x398   : > { %2355 = vcosq.f32 %v1693_v60  ;;  %v1736_v63 = vshrl.u32 %v2438_v18, %v1724_v61  ;;  %v1734_v24 = vor.u32 %v1733_v44, %v1732_v15  ;;  %v1731_v48 = vor.u32 %v1730_v5, %v1729_v13 }
 0x399   : > { %2357 = vsinq.f32 %v1693_v60  ;;  %v1581_v45 = vand.u32 2147483647, %v1580_v51  ;;  %v3487_v47 = vsub.s32 %v1873_v41, %v1876_v37  ;;  %v1738_v40 = vshll.u32 %v2438_v18, %v1723_v62 }
 0x39a   : > { %v1737_v27 = vor.u32 %v1736_v63, %v1735_v35  ;;  %v1739_v3 = vshrl.u32 %v2439_v31, %v1724_v61  ;;  %v1590_v29 = vsel %vm3459_vm9, 0, %v3466_v33  ;;  %v1757_v2 = vshll.u32 %v1717_v9, 8 }
 0x39b   : > { %v1584_v38 = vmul.f32 %v1583_v23, %v1581_v45  ;;  %v1879_v16 = vsub.s32 0, %v3487_v47  ;;  %v1725_v19 = vshrl.u32 %v2440_v36, %v1724_v61  ;;  %vm1741_vm10 = vcmp.lt.s32.totalorder %v3469_v39, 1 }
 0x39c   : > { %v1740_v28 = vor.u32 %v1739_v3, %v1738_v40  ;;  %vm1744_vm11 = vcmp.lt.s32.totalorder %v3469_v39, 4  ;;  %vm1742_vm12 = vcmp.lt.s32.totalorder %v3469_v39, 2  ;;  %vm1743_vm13 = vcmp.lt.s32.totalorder %v3469_v39, 3 }
 0x39d   : > { %v1585_v26 = vxor.u32 2147483648, %v1584_v38  ;;  %v2128_v18 = vmin.u32 %v1879_v16, %v3487_v47  ;;  %v1746_v31 = vsel %vm1744_vm11, %v1734_v24, 2102212464  ;;  %v1745_v6 = vsel %vm1741_vm10, %v1725_v19, %v1728_v22 }
 0x39e   : > { %v1749_v21 = vsel %vm1741_vm10, %v1728_v22, %v1731_v48  ;;  %v1750_v36 = vsel %vm1744_vm11, %v1737_v27, 920167782  ;;  %v1753_v43 = vsel %vm1741_vm10, %v1731_v48, %v1734_v24  ;;  %v1747_v41 = vsel %vm1743_vm13, %v1731_v48, %v1746_v31 }
 0x39f   : > { %v1586_v9 = vsel %vm1503_vm4, %v1585_v26, %v1584_v38  ;;  %v1881_v62 = vclz %v2128_v18  ;;  %v1751_v25 = vsel %vm1743_vm13, %v1734_v24, %v1750_v36  ;;  %v1754_v33 = vsel %vm1744_vm11, %v1740_v28, 1326507024 }
 0x3a0   : > { %v1589_v42 = vsel %vm3459_vm9, %v3286_v50, %v1586_v9  ;;  %v1752_v20 = vsel %vm1742_vm12, %v1749_v21, %v1751_v25  ;;  %v1755_v46 = vsel %vm1743_vm13, %v1737_v27, %v1754_v33  ;;  %v1699_v59 = vand.u32 3, %v3455_v32 }
 0x3a1   : > { %2359 = vcosq.f32 %v1589_v42  ;;  %v2129_v61 = vadd.s32 4294967294, %v1881_v62  ;;  %v1756_v55 = vsel %vm1742_vm12, %v1753_v43, %v1755_v46  ;;  %v1748_v0 = vsel %vm1742_vm12, %v1745_v6, %v1747_v41 }
 0x3a2   : > { %v2356_v17 = vpop.eup %2355  ;;  %2361 = vsinq.f32 %v1589_v42  ;;  %v3517_v8 = vmul.u32.u64.low %v1757_v2, %v1752_v20  ;;  %v3518_v49 = vmul.u32.u64.high %v1757_v2, %v1752_v20, %v3517_v8  ;;  %v1594_v44 = vadd.s32 3, %v1590_v29 }
 0x3a3   : > { %v2358_v53 = vpop.eup %2357  ;;  %vm2130_vm14 = vcmp.lt.s32.totalorder %v2129_v61, 0  ;;  %v3523_v1 = vmul.u32.u64.low %v1757_v2, %v1756_v55  ;;  %v3524_v56 = vmul.u32.u64.high %v1757_v2, %v1756_v55, %v3523_v1  ;;  %vm1697_vm15 = vweird.f32 %v3284_v7 }
 0x3a4   : > { %v1884_v57 = vsel %vm2130_vm14, 0, %v2129_v61  ;;  %v1702_v32 = vxor.u32 2147483648, %v2358_v53  ;;  %vm1701_vm0 = vcmp.eq.s32.totalorder %v1699_v59, 0  ;;  %v1764_v5 = vmul.u32 %v1757_v2, %v1748_v0 }
 0x3a5   : > { %v1889_v13 = vsub.s32 4294967266, %v1884_v57  ;;  %v1767_v15 = vadd.s32 1, %v3518_v49  ;;  %v1705_v51 = vxor.u32 2147483648, %v2356_v17  ;;  %v1885_v37 = vsub.s32 32, %v1884_v57 }
 0x3a6   : > { %v1703_v60 = vsel %vm1701_vm0, %v2356_v17, %v1702_v32  ;;  %vm1766_vm2 = vc.u32 %v3524_v56, %v3517_v8  ;;  %vm1704_vm3 = vcmp.eq.s32.totalorder %v1699_v59, 2  ;;  %v1595_v23 = vand.u32 3, %v1594_v44 }
 0x3a7   : > { %v1890_v22 = vadd.s32 127, %v1889_v13  ;;  %v1768_v39 = vsel %vm1766_vm2, %v1767_v15, %v3518_v49  ;;  %vm1700_vm4 = vcmp.lt.s32.totalorder %v1699_v59, 2  ;;  %v1706_v35 = vsel %vm1704_vm3, %v1705_v51, %v2358_v53 }
 0x3a8   : > { %v1869_v63 = vadd.s32 %v3427_v52, %v3435_v54  ;;  %v1769_v24 = vadd.s32 %v1768_v39, %v1764_v5  ;;  %v1707_v48 = vsel %vm1700_vm4, %v1703_v60, %v1706_v35  ;;  %vm2444_vm5 = vmmov 0  }
 0x3a9   : > { %v1891_v45 = vshll.u32 %v1890_v22, 23  ;;  %v1708_v27 = vsel %vm1697_vm15, nan, %v1707_v48  ;;  %v2445_v29 = vmov 0.0   ;;  %vm1600_vm6 = vcmp.eq.s32.totalorder %v1595_v23, 2 }
 0x3aa   : > { %v1887_v3 = vshrl.u32 %v1869_v63, %v1885_v37  ;;  %v1770_v38 = vadd.s32 536870912, %v1769_v24  ;;  %2192 = vmatprep.mubr.msk.f32.mxu0 %vm2444_vm5, %v2445_v29  ;;  %v1886_v19 = vshll.u32 %v3487_v47, %v1884_v57  ;;  %vm1597_vm7 = vcmp.eq.s32.totalorder %v1595_v23, 0 }
 0x3ab   : > { %v2360_v40 = vpop.eup %2359  ;;  %v1892_v28 = vor.u32 4788187, %v1891_v45  ;;  %vm1596_vm8 = vcmp.lt.s32.totalorder %v1595_v23, 2  ;;  %vm1593_vm9 = vweird.f32 %v3286_v50  ;;  %vm1815_vm11 = vcmp.lt.s32.totalorder %v3294_v34, 0 }
 0x3ac   : > { %v2362_v16 = vpop.eup %2361  ;;  %v1601_v2 = vxor.u32 2147483648, %v2360_v40  ;;  %v1771_v26 = vshrl.u32 %v1770_v38, 30  ;;  %v1888_v18 = vor.u32 %v1887_v3, %v1886_v19  ;;  %v1765_v46 = vadd.s32 %v3517_v8, %v3524_v56 }
 0x3ad   : > { %v1598_v52 = vxor.u32 2147483648, %v2362_v16  ;;  %v1893_v21 = vand.u32 2147483647, %v1892_v28  ;;  %vm3545_vm12 = vcmp.le.f32.partialorder %v1813_v10, 0.7853982  ;;  %v1899_v57 = vsub.s32 4, %v3473_v30 }
 0x3ae   : > { %v1602_v54 = vsel %vm1600_vm6, %v1601_v2, %v2362_v16  ;;  %v1772_v31 = vshll.u32 %v1771_v26, 30  ;;  %v1895_v25 = vcvt.s32.f32 %v1888_v18  ;;  %v1795_v5 = vsub.s32 4, %v1771_v26 }
 0x3af   : > { %v1599_v7 = vsel %vm1597_vm7, %v2360_v40, %v1598_v52  ;;  %v1900_v10 = vsel %vm1815_vm11, %v1899_v57, %v3473_v30  ;;  %vm1711_vm13 = vcmp.lt.s32.totalorder %v3299_v58, 0  ;;  %vm1710_vm14 = vcmp.le.f32.partialorder %v1709_v4, 0.7853982 }
 0x3b0   : > { %v1603_v6 = vsel %vm1596_vm8, %v1599_v7, %v1602_v54  ;;  %v1773_v36 = vsub.s32 %v1769_v24, %v1772_v31  ;;  %v1896_v47 = vmul.f32 %v1895_v25, %v1893_v21  ;;  %v1902_v15 = vsel %vm3545_vm12, 0, %v1900_v10  ;;  %v1917_v31 = vld [vmem:[%s3624_s7] sm:$0x1]  ;;  %v1922_v7 = vpop.permute.xlu0 %1921 }
 0x3b1   : > { %v1604_v9 = vsel %vm1593_vm9, nan, %v1603_v6  ;;  %v1796_v37 = vsel %vm1711_vm13, %v1795_v5, %v1771_v26  ;;  %v1906_v22 = vadd.s32 3, %v1902_v15  ;;  %vm1905_vm5 = vweird.f32 %v3294_v34 }
 0x3b2   : > { %v2212_v62 = vpack.c.bf16 %v1708_v27, %v1604_v9  ;;  %v1775_v43 = vsub.s32 0, %v1773_v36  ;;  %v1897_v20 = vxor.u32 2147483648, %v1896_v47  ;;  %v1798_v30 = vsel %vm1710_vm14, 0, %v1796_v37 }
 0x3b3   : > { %v1907_v63 = vand.u32 3, %v1906_v22  ;;  %v1802_v45 = vadd.s32 3, %v1798_v30  ;;  %vm1801_vm7 = vweird.f32 %v3299_v58 }
 0x3b4   : > { %2213 = vmatpush3.bf16.msra.mxu0 %v2212_v62  ;;  %v2124_v42 = vmin.u32 %v1775_v43, %v1773_v36  ;;  %v1898_v50 = vsel %vm1815_vm11, %v1897_v20, %v1896_v47 }
 0x3b5   : > { %2214 = vmatprep.subr.bf16.mxu0 %v2443_v11  ;;  %v1901_v0 = vsel %vm3545_vm12, %v3294_v34, %v1898_v50  ;;  %vm1909_vm15 = vcmp.eq.s32.totalorder %v1907_v63, 0  ;;  %vm1912_vm0 = vcmp.eq.s32.totalorder %v1907_v63, 2  ;;  %v1803_v27 = vand.u32 3, %v1802_v45 }
 0x3b6   : > { %v1777_v41 = vclz %v2124_v42  ;;  %2363 = vcosq.f32 %v1901_v0  ;;  %vm1908_vm2 = vcmp.lt.s32.totalorder %v1907_v63, 2  ;;  %v1927_v34 = vrot.slane %v1922_v7, %v360_v14 }
 0x3b7   : > { %2365 = vsinq.f32 %v1901_v0  ;;  %vm1808_vm3 = vcmp.eq.s32.totalorder %v1803_v27, 2  ;;  %vm1805_vm4 = vcmp.eq.s32.totalorder %v1803_v27, 0  ;;  %vm1804_vm6 = vcmp.lt.s32.totalorder %v1803_v27, 2 }
 0x3b8   : > { %v2125_v33 = vadd.s32 4294967294, %v1777_v41 }
 0x3ba   : > { %vm2126_vm10 = vcmp.lt.s32.totalorder %v2125_v33, 0 }
 0x3bb   : > { %v1780_v61 = vsel %vm2126_vm10, 0, %v2125_v33 }
 0x3bc   : > { %v1781_v59 = vsub.s32 32, %v1780_v61  ;;  %v1785_v17 = vsub.s32 4294967266, %v1780_v61  ;;  %v1782_v11 = vshll.u32 %v1773_v36, %v1780_v61 }
 0x3be   : > { %v1783_v49 = vshrl.u32 %v1765_v46, %v1781_v59  ;;  %v1786_v53 = vadd.s32 127, %v1785_v17 }
 0x3c0   : > { %v1784_v1 = vor.u32 %v1783_v49, %v1782_v11  ;;  %v1787_v44 = vshll.u32 %v1786_v53, 23  ;;  %v2364_v23 = vpop.eup %2363 }
 0x3c1   : > { %v2366_v35 = vpop.eup %2365  ;;  %v1913_v48 = vxor.u32 2147483648, %v2364_v23 }
 0x3c2   : > { %v1788_v8 = vor.u32 4788187, %v1787_v44  ;;  %v1791_v32 = vcvt.s32.f32 %v1784_v1  ;;  %v1910_v24 = vxor.u32 2147483648, %v2366_v35 }
 0x3c3   : > { %v1914_v3 = vsel %vm1912_vm0, %v1913_v48, %v2366_v35 }
 0x3c4   : > { %v1789_v56 = vand.u32 2147483647, %v1788_v8  ;;  %v1911_v40 = vsel %vm1909_vm15, %v2364_v23, %v1910_v24 }
 0x3c5   : > { %v1915_v16 = vsel %vm1908_vm2, %v1911_v40, %v1914_v3 }
 0x3c6   : > { %v1792_v13 = vmul.f32 %v1791_v32, %v1789_v56  ;;  %v1916_v26 = vsel %vm1905_vm5, nan, %v1915_v16 }
 0x3c8   : > { %v1793_v60 = vxor.u32 2147483648, %v1792_v13 }
 0x3ca   : > { %v1794_v51 = vsel %vm1711_vm13, %v1793_v60, %v1792_v13 }
 0x3cb   : > { %v1797_v39 = vsel %vm1710_vm14, %v3299_v58, %v1794_v51 }
 0x3cc   : > { %2367 = vcosq.f32 %v1797_v39 }
 0x3cd   : > { %2369 = vsinq.f32 %v1797_v39 }
 0x3d6   : > { %v2368_v4 = vpop.eup %2367 }
 0x3d7   : > { %v2370_v38 = vpop.eup %2369  ;;  %v1809_v29 = vxor.u32 2147483648, %v2368_v4 }
 0x3d8   : > { %v1806_v2 = vxor.u32 2147483648, %v2370_v38 }
 0x3d9   : > { %v1810_v19 = vsel %vm1808_vm3, %v1809_v29, %v2370_v38 }
 0x3da   : > { %v1807_v28 = vsel %vm1805_vm4, %v2368_v4, %v1806_v2 }
 0x3db   : > { %v1811_v52 = vsel %vm1804_vm6, %v1807_v28, %v1810_v19 }
 0x3dc   : > { %v1812_v54 = vsel %vm1801_vm7, nan, %v1811_v52 }
 0x3dd   : > { %v2215_v18 = vpack.c.bf16 %v1916_v26, %v1812_v54 }
 0x3df   : > { %2216 = vmatpush3.bf16.msra.mxu0 %v2215_v18 }
 0x3e2   : > { %2193 = vmatmul.mubr.msk.f32.vlgmr.msra.gmra.mrb[4].mxu0 %vm862_vm1, %v1917_v31 }
 0x4b5   : > { %v1997_v58 = vpop.f32.mrb[4].mxu0 }
 0x4b6   : > { %v1998_v6 = vadd.f32 %v1997_v58, %v1927_v34  ;;  %v2194_v21 = vpop.f32.mrb[5].mxu0 }
 0x4b8   : > { %2001 = vst [vmem:[%s324_s27] sm:$0x1] %v1998_v6 }
 0x4b9   : > { %2384 = shalt.err (!%p2381_p3)
}
 0x4ba   : > { %s2385_s23 = scalar_lea.hbm %s3575_s10, 16  ;;  %s2389_s26 = scalar_lea.hbm %s3626_s9, 32 }
 0x4bb   : > { %p2386_p4 = scmp.ne.s32.totalorder %s3575_s10, %s2385_s23  ;;  %p2390_p9 = scmp.lt.u32.totalorder %s3575_s10, %s3626_s9 }
 0x4bc   : > { %p2391_p10 = scmp.lt.u32.totalorder %s2389_s26, %s2385_s23  ;;  %p2393_p12 = scmp.lt.u32.totalorder %s2385_s23, %s3575_s10 }
 0x4bd   : > { %p2387_p7 = pnand %p2386_p4, %p2538_p5 }
 0x4be   : > { %p2392_p11 = por %p2391_p10, %p2390_p9 }
 0x4bf   : > { %p2388_p8 = pneg %p2387_p7 }
 0x4c0   : > { %p2394_p13 = por %p2393_p12, %p2392_p11 }
 0x4c2   : > { %p2395_p0 = pnand %p2394_p13, %p2388_p8 }
 0x4c4   : > { %2398 = shalt.err (!%p2395_p0)
}
 0x4c5   : > { %2265 = dma.vmem_to_hbm [thread:$0]  (%p2538_p5), %s3577_s28, 16, %s3575_s10, %s2003_s8  }
 0x4c6 PF: > { %p2271_p1 = scmp.ge.s32.totalorder %s2433_s14, 2  ;;  %s2027_s30 = sand.u32 1, %s2421_s11  }
 0x4c7   : > { %s2028_s15 = scalar_lea.sflag [#allocation4], %s2027_s30 }
 0x4c8   : > { %p2268_p2 = pnand %p2271_p1, %p2542_p6 }
 0x4ca   : > { %2416 = dma.done.wait (!%p2268_p2), %s2028_s15, 16  }
 0x4cb   : > { %2418 = vsyncadd (!%p2268_p2), %s2028_s15, 4294967280  ;;  %p21_p3 = scmp.ge.s32.totalorder %s2525_s16, 4   ;;  %s3647_s11 = smov %s2425_s12 }
 0x4cc   : > { %s3648_s12 = smov %s2429_s13  ;;  %s3649_s13 = smov %s2536_s19 }
 0x4cd   : > { %s3650_s14 = smov %s2525_s16  ;;  %23 = sbr.rel (!%p21_p3) target bundleno = 6 (0x6), region = 91 }
 0x4d4   :  { %2032 = vsyncpa [#allocation4], 1 }
 0x4d5   :  { %2034 = vsyncpa [#allocation4 + $0x1], 1 }

</bundles_post_ra>
